<compile_context>
chip_gen: v5e
topology: v5e:2x2
jax: 0.10.0
libtpu: 0.0.40
codegen_flags: <defaults>
</compile_context>

<pallas_src>
import functools
from typing import NamedTuple

import jax
import jax.numpy as jnp
from jax.experimental import pallas as pl
from jax.experimental.pallas import tpu as pltpu

_LANE = 128


class PreparedParams(NamedTuple):
    fused_qkv: bool
    n_heads: int
    hid_dim: int
    w_in: jax.Array    # (Din, 3H) if fused else (3, Din, H)   [compute dtype]
    b_in: jax.Array    # (1, 3H)   if fused else (3, 1, H)     [f32]
    w_fc: jax.Array    # (n_heads, head_dim, Hp)               [compute dtype]
    b_fc: jax.Array    # (1, Hp)                               [f32]


def prepare_params(params, n_heads, *, fuse_qkv, compute_dtype=jnp.float32):
    """One-time weight preprocessing (hoisted out of the per-call path).

    Folds the 1/sqrt(head_dim) softmax scale into the Q projection, fuses or
    stacks the QKV weights, splits the fc weight per head, pads the fc output
    columns to a 128-lane multiple (lane-dense unmasked output stores) and
    casts the MXU-operand weights to `compute_dtype` (bf16 on v6e/v7x).
    """
    wq, bq, wk, bk, wv, bv, wf, bf = params
    _, hid_dim = wq.shape
    assert hid_dim % n_heads == 0
    head_dim = hid_dim // n_heads

    inv_scale = 1.0 / float(head_dim) ** 0.5
    wq_s, bq_s = wq * inv_scale, bq * inv_scale

    if fuse_qkv:
        w_in = jnp.concatenate([wq_s, wk, wv], axis=1).astype(compute_dtype)
        b_in = jnp.concatenate([bq_s, bk, bv], axis=1).astype(jnp.float32)
    else:
        w_in = jnp.stack([wq_s, wk, wv], axis=0).astype(compute_dtype)
        b_in = jnp.stack([bq_s, bk, bv], axis=0).astype(jnp.float32)

    # Lane-pad the fc output so the kernel's output store is lane-dense
    # (unmasked).  No-op when hid_dim is already a multiple of 128.
    hp = ((hid_dim + _LANE - 1) // _LANE) * _LANE
    wf_p = jnp.pad(wf, ((0, 0), (0, hp - hid_dim)))
    bf_p = jnp.pad(bf, ((0, 0), (0, hp - hid_dim)))
    w_fc = wf_p.reshape(n_heads, head_dim, hp).astype(compute_dtype)
    b_fc = bf_p.astype(jnp.float32)

    return PreparedParams(bool(fuse_qkv), n_heads, hid_dim,
                          w_in, b_in, w_fc, b_fc)


def _self_attention_kernel(*refs, n_heads, head_dim, fused_qkv):
    if fused_qkv:
        x_ref, w_ref, b_ref, wf_ref, bf_ref, o_ref = refs
        q_ref = x_ref
    else:
        q_ref, k_ref, v_ref, w_ref, b_ref, wf_ref, bf_ref, o_ref = refs

    Bt, S, _ = q_ref.shape
    M = Bt * S
    H = n_heads * head_dim          # true hid_dim
    Hp = wf_ref.shape[-1]           # lane-padded fc width (>= H)
    cdt = w_ref.dtype               # MXU operand dtype (f32, or bf16 on v6e/v7x)

    # ---- QKV projection (MXU accumulates in f32; bias add in f32) ---------
    if fused_qkv:
        # True self-attention: one wide (M, Din) @ (Din, 3H) matmul.  The
        # 1/sqrt(head_dim) scale is already folded into the Q columns.
        x = x_ref[...].reshape(M, x_ref.shape[-1]).astype(cdt)
        y = jnp.dot(x, w_ref[...], preferred_element_type=jnp.float32) + b_ref[...]
        q_all = k_all = v_all = y
        q_off, k_off, v_off = 0, H, 2 * H
    else:
        def proj(seq_ref, g):
            x = seq_ref[...].reshape(M, seq_ref.shape[-1]).astype(cdt)
            return jnp.dot(x, w_ref[g],
                           preferred_element_type=jnp.float32) + b_ref[g]
        q_all, k_all, v_all = proj(q_ref, 0), proj(k_ref, 1), proj(v_ref, 2)
        q_off = k_off = v_off = 0

    # ---- Head split, paid once: heads onto the leading (batch) axis -------
    def to_heads(mat, off):
        parts = [mat[:, off + h * head_dim: off + (h + 1) * head_dim]
                 for h in range(n_heads)]                      # each (M, hd)
        stacked = jnp.concatenate(parts, axis=0)               # (n_heads*M, hd)
        return stacked.reshape(n_heads * Bt, S, head_dim).astype(cdt)

    qb = to_heads(q_all, q_off)
    kb = to_heads(k_all, k_off)
    vb = to_heads(v_all, v_off)

    # ---- One batched attention over all (head, batch) pairs ----------------
    # Trans-B contraction (no materialized K^T); softmax math stays f32.
    e = jnp.einsum('nqd,nkd->nqk', qb, kb,
                   preferred_element_type=jnp.float32)         # (n*Bt, S, S)
    m = jnp.max(e, axis=-1, keepdims=True)
    p = jnp.exp(e - m)
    inv = pl.reciprocal(jnp.sum(p, axis=-1, keepdims=True), approx=True)
    ctx = jnp.einsum('nqk,nkd->nqd', (p * inv).astype(cdt), vb,
                     preferred_element_type=jnp.float32)       # (n*Bt, S, hd)

    # ---- Output projection: per-head register accumulation -----------------
    # No ctx scratch slab, no 8-lane masked sub-range writes, no slab reload.
    out = jnp.zeros((M, Hp), jnp.float32)
    for h in range(n_heads):
        ctx_h = ctx[h * Bt:(h + 1) * Bt].reshape(M, head_dim).astype(cdt)
        out = out + jnp.dot(ctx_h, wf_ref[h],
                            preferred_element_type=jnp.float32)
    out = out + bf_ref[...]

    # Lane-dense store: last dim Hp is a multiple of 128 -> unmasked vst.
    o_ref[...] = out.reshape(Bt, S, Hp).astype(o_ref.dtype)


def self_attention(query, key, value, prepared, *, batch_tile=None,
                   vmem_limit_bytes=32 * 1024 * 1024):
    """query/key/value: (B, S, input_dim) f32.  Returns (B, S, hid_dim) f32.

    `prepared` comes from prepare_params().  When prepared.fused_qkv is True
    the kernel computes true self-attention from `query` alone (key/value are
    assumed equal to query by the caller's choice of fuse_qkv).
    """
    B, S, Din = query.shape
    H, n_heads = prepared.hid_dim, prepared.n_heads
    head_dim = H // n_heads
    Hp = prepared.w_fc.shape[-1]

    if batch_tile is None:
        # >= 2 grid steps when the batch allows it, so ("parallel",) can shard
        # across v7x's two TensorCores (and the pipeline has something to
        # double-buffer on v5e/v6e).  Falls back gracefully for tiny/odd B.
        batch_tile = B // 2 if (B >= 2 and B % 2 == 0) else (1 if B > 1 else B)
    Bt = batch_tile
    assert B % Bt == 0, "batch_tile must divide batch"

    kernel = functools.partial(_self_attention_kernel, n_heads=n_heads,
                               head_dim=head_dim,
                               fused_qkv=prepared.fused_qkv)

    if prepared.fused_qkv:
        qkv_inputs = (query,)
        qkv_specs = [pl.BlockSpec((Bt, S, Din), lambda b: (b, 0, 0))]
    else:
        seq_spec = pl.BlockSpec((Bt, S, Din), lambda b: (b, 0, 0))
        qkv_inputs = (query, key, value)
        qkv_specs = [seq_spec, seq_spec, seq_spec]

    weights = (prepared.w_in, prepared.b_in, prepared.w_fc, prepared.b_fc)

    def call(single_buffer_weights):
        def w_spec(arr):
            shape = arr.shape
            index_map = lambda b, _n=len(shape): (0,) * _n
            if single_buffer_weights:
                # Constant-index weight blocks: single-buffer them to halve
                # their VMEM footprint (matters at real Din/H, especially on
                # v7x's 64 MiB VMEM).
                return pl.BlockSpec(shape, index_map,
                                    pipeline_mode=pl.Buffered(1))
            return pl.BlockSpec(shape, index_map)

        return pl.pallas_call(
            kernel,
            out_shape=jax.ShapeDtypeStruct((B, S, Hp), jnp.float32),
            grid_spec=pltpu.PrefetchScalarGridSpec(
                num_scalar_prefetch=0,
                grid=(B // Bt,),
                in_specs=list(qkv_specs) + [w_spec(w) for w in weights],
                out_specs=pl.BlockSpec((Bt, S, Hp), lambda b: (b, 0, 0)),
            ),
            compiler_params=pltpu.CompilerParams(
                # Batch-tile axis is independent -> megacore sharding on v7x.
                dimension_semantics=("parallel",),
                # >= default scoped limit on all generations, well under
                # v7x's 64 MiB physical VMEM; working set here is < 1 MiB.
                vmem_limit_bytes=vmem_limit_bytes,
            ),
        )(*qkv_inputs, *weights)

    try:
        out = call(single_buffer_weights=True)
    except Exception:
        # Fallback for jax versions without pipeline_mode=pl.Buffered support:
        # identical kernel, default double-buffered weight blocks.
        out = call(single_buffer_weights=False)

    # Strip the lane padding outside the kernel (free at real hid_dim).
    return out[..., :H] if Hp != H else out


def init_params(key, input_dim, hid_dim):
    """Deterministic synthetic parameters. Weights stored as (in, out)."""
    ks = jax.random.split(key, 8)
    s_in = 1.0 / jnp.sqrt(jnp.float32(input_dim))
    s_h = 1.0 / jnp.sqrt(jnp.float32(hid_dim))
    wq = jax.random.uniform(ks[0], (input_dim, hid_dim), jnp.float32, -s_in, s_in)
    bq = jax.random.uniform(ks[1], (1, hid_dim), jnp.float32, -s_in, s_in)
    wk = jax.random.uniform(ks[2], (input_dim, hid_dim), jnp.float32, -s_in, s_in)
    bk = jax.random.uniform(ks[3], (1, hid_dim), jnp.float32, -s_in, s_in)
    wv = jax.random.uniform(ks[4], (input_dim, hid_dim), jnp.float32, -s_in, s_in)
    bv = jax.random.uniform(ks[5], (1, hid_dim), jnp.float32, -s_in, s_in)
    wf = jax.random.uniform(ks[6], (hid_dim, hid_dim), jnp.float32, -s_h, s_h)
    bf = jax.random.uniform(ks[7], (1, hid_dim), jnp.float32, -s_h, s_h)
    return (wq, bq, wk, bk, wv, bv, wf, bf)


def self_attention_ref(query, key, value, params, *, n_heads):
    """Pure-JAX reference mirroring the PyTorch forward, for validation."""
    wq, bq, wk, bk, wv, bv, wf, bf = params
    B, S, _ = query.shape
    H = wq.shape[1]
    hd = H // n_heads
    Q = query @ wq + bq
    K = key @ wk + bk
    V = value @ wv + bv
    Q = Q.reshape(B, S, n_heads, hd).transpose(0, 2, 1, 3)
    K = K.reshape(B, S, n_heads, hd).transpose(0, 2, 1, 3)
    V = V.reshape(B, S, n_heads, hd).transpose(0, 2, 1, 3)
    energy = jnp.einsum("bhqd,bhkd->bhqk", Q, K) / jnp.sqrt(jnp.float32(hd))
    attn = jax.nn.softmax(energy, axis=-1)
    x = jnp.einsum("bhqk,bhkd->bhqd", attn, V)
    x = x.transpose(0, 2, 1, 3).reshape(B, S, H)
    return x @ wf + bf


if __name__ == "__main__":
    B, S, INPUT_DIM, HID_DIM, N_HEADS = 2, 8, 32, 32, 4

    root = jax.random.PRNGKey(0)
    kq, kk, kv, kp = jax.random.split(root, 4)
    query = jax.random.normal(kq, (B, S, INPUT_DIM), jnp.float32)
    key_in = jax.random.normal(kk, (B, S, INPUT_DIM), jnp.float32)
    value = jax.random.normal(kv, (B, S, INPUT_DIM), jnp.float32)
    params = init_params(kp, INPUT_DIM, HID_DIM)

    # Tolerance is loosened only for the EUP approximate reciprocal in the
    # softmax normalization; everything else on the f32 paths is exact-path.
    TOL = 1e-2

    # 1) General path: distinct query / key / value, f32 MXU operands.
    prep = prepare_params(params, N_HEADS, fuse_qkv=False)
    out = jax.block_until_ready(self_attention(query, key_in, value, prep))
    ref = self_attention_ref(query, key_in, value, params, n_heads=N_HEADS)
    assert out.shape == (B, S, HID_DIM)
    assert jnp.allclose(out, ref, atol=TOL, rtol=TOL), "mismatch (general path)"

    # 2) Fused path: true self-attention (q = k = v) -> single (Din,3H) matmul.
    prep_fused = prepare_params(params, N_HEADS, fuse_qkv=True)
    out2 = jax.block_until_ready(self_attention(query, query, query, prep_fused))
    ref2 = self_attention_ref(query, query, query, params, n_heads=N_HEADS)
    assert jnp.allclose(out2, ref2, atol=TOL, rtol=TOL), "mismatch (fused path)"

    # 3) bf16 MXU-operand path (v6e/v7x recommendation); softmax stays f32.
    prep_bf16 = prepare_params(params, N_HEADS, fuse_qkv=True,
                               compute_dtype=jnp.bfloat16)
    out3 = jax.block_until_ready(self_attention(query, query, query, prep_bf16))
    assert jnp.allclose(out3, ref2, atol=5e-2, rtol=5e-2), "mismatch (bf16 path)"

    print("KERNEL_OK")
</pallas_src>

<mosaic_0001>
module attributes {stable_mosaic.version = 11 : i64} {
  func.func @_self_attention_kernel(%arg0: i32, %arg1: memref<1x8x32xf32, #tpu.memory_space<vmem>>, %arg2: memref<1x8x32xf32, #tpu.memory_space<vmem>>, %arg3: memref<1x8x32xf32, #tpu.memory_space<vmem>>, %arg4: memref<3x32x32xf32, #tpu.memory_space<vmem>>, %arg5: memref<3x1x32xf32, #tpu.memory_space<vmem>>, %arg6: memref<4x8x128xf32, #tpu.memory_space<vmem>>, %arg7: memref<1x128xf32, #tpu.memory_space<vmem>>, %arg8: memref<1x8x128xf32, #tpu.memory_space<vmem>>) attributes {dimension_semantics = [#tpu.dimension_semantics<parallel>], iteration_bounds = array<i64: 2>, scalar_prefetch = 0 : i64, scratch_operands = 0 : i64, tpu.core_type = #tpu.core_type<tc>, window_params = [{transform_indices = @transform_0, window_bounds = array<i64: 1, 8, 32>}, {transform_indices = @transform_1, window_bounds = array<i64: 1, 8, 32>}, {transform_indices = @transform_2, window_bounds = array<i64: 1, 8, 32>}, {pipeline_mode = #tpu.pipeline_mode<synchronous>, transform_indices = @transform_3, window_bounds = array<i64: 3, 32, 32>}, {pipeline_mode = #tpu.pipeline_mode<synchronous>, transform_indices = @transform_4, window_bounds = array<i64: 3, 1, 32>}, {pipeline_mode = #tpu.pipeline_mode<synchronous>, transform_indices = @transform_5, window_bounds = array<i64: 4, 8, 128>}, {pipeline_mode = #tpu.pipeline_mode<synchronous>, transform_indices = @transform_6, window_bounds = array<i64: 1, 128>}, {transform_indices = @transform_7, window_bounds = array<i64: 1, 8, 128>}]} {
    %c0 = arith.constant 0 : index
    %c0_0 = arith.constant 0 : index
    %c0_1 = arith.constant 0 : index
    %0 = vector.load %arg1[%c0, %c0_0, %c0_1] : memref<1x8x32xf32, #tpu.memory_space<vmem>>, vector<1x8x32xf32>
    %1 = vector.shape_cast %0 : vector<1x8x32xf32> to vector<8x32xf32>
    %c0_2 = arith.constant 0 : index
    %c0_3 = arith.constant 0 : index
    %c0_4 = arith.constant 0 : index
    %2 = vector.load %arg4[%c0_2, %c0_3, %c0_4] : memref<3x32x32xf32, #tpu.memory_space<vmem>>, vector<1x32x32xf32>
    %3 = vector.shape_cast %2 : vector<1x32x32xf32> to vector<32x32xf32>
    %cst = arith.constant dense<0.000000e+00> : vector<8x32xf32>
    %4 = tpu.matmul %1, %3, %cst {dimension_numbers = #tpu.dot_dimension_numbers<[1], [0], [0], [1], [0, 0, 1, 1], [], []>} : vector<8x32xf32>, vector<32x32xf32>, vector<8x32xf32> -> vector<8x32xf32>
    %c0_5 = arith.constant 0 : index
    %c0_6 = arith.constant 0 : index
    %c0_7 = arith.constant 0 : index
    %5 = vector.load %arg5[%c0_5, %c0_6, %c0_7] : memref<3x1x32xf32, #tpu.memory_space<vmem>>, vector<1x1x32xf32>
    %6 = vector.shape_cast %5 : vector<1x1x32xf32> to vector<1x32xf32>
    %7 = vector.broadcast %6 : vector<1x32xf32> to vector<8x32xf32>
    %8 = arith.addf %4, %7 : vector<8x32xf32>
    %c0_8 = arith.constant 0 : index
    %c0_9 = arith.constant 0 : index
    %c0_10 = arith.constant 0 : index
    %9 = vector.load %arg2[%c0_8, %c0_9, %c0_10] : memref<1x8x32xf32, #tpu.memory_space<vmem>>, vector<1x8x32xf32>
    %10 = vector.shape_cast %9 : vector<1x8x32xf32> to vector<8x32xf32>
    %c1 = arith.constant 1 : index
    %c0_11 = arith.constant 0 : index
    %c0_12 = arith.constant 0 : index
    %11 = vector.load %arg4[%c1, %c0_11, %c0_12] : memref<3x32x32xf32, #tpu.memory_space<vmem>>, vector<1x32x32xf32>
    %12 = vector.shape_cast %11 : vector<1x32x32xf32> to vector<32x32xf32>
    %cst_13 = arith.constant dense<0.000000e+00> : vector<8x32xf32>
    %13 = tpu.matmul %10, %12, %cst_13 {dimension_numbers = #tpu.dot_dimension_numbers<[1], [0], [0], [1], [0, 0, 1, 1], [], []>} : vector<8x32xf32>, vector<32x32xf32>, vector<8x32xf32> -> vector<8x32xf32>
    %c1_14 = arith.constant 1 : index
    %c0_15 = arith.constant 0 : index
    %c0_16 = arith.constant 0 : index
    %14 = vector.load %arg5[%c1_14, %c0_15, %c0_16] : memref<3x1x32xf32, #tpu.memory_space<vmem>>, vector<1x1x32xf32>
    %15 = vector.shape_cast %14 : vector<1x1x32xf32> to vector<1x32xf32>
    %16 = vector.broadcast %15 : vector<1x32xf32> to vector<8x32xf32>
    %17 = arith.addf %13, %16 : vector<8x32xf32>
    %c0_17 = arith.constant 0 : index
    %c0_18 = arith.constant 0 : index
    %c0_19 = arith.constant 0 : index
    %18 = vector.load %arg3[%c0_17, %c0_18, %c0_19] : memref<1x8x32xf32, #tpu.memory_space<vmem>>, vector<1x8x32xf32>
    %19 = vector.shape_cast %18 : vector<1x8x32xf32> to vector<8x32xf32>
    %c2 = arith.constant 2 : index
    %c0_20 = arith.constant 0 : index
    %c0_21 = arith.constant 0 : index
    %20 = vector.load %arg4[%c2, %c0_20, %c0_21] : memref<3x32x32xf32, #tpu.memory_space<vmem>>, vector<1x32x32xf32>
    %21 = vector.shape_cast %20 : vector<1x32x32xf32> to vector<32x32xf32>
    %cst_22 = arith.constant dense<0.000000e+00> : vector<8x32xf32>
    %22 = tpu.matmul %19, %21, %cst_22 {dimension_numbers = #tpu.dot_dimension_numbers<[1], [0], [0], [1], [0, 0, 1, 1], [], []>} : vector<8x32xf32>, vector<32x32xf32>, vector<8x32xf32> -> vector<8x32xf32>
    %c2_23 = arith.constant 2 : index
    %c0_24 = arith.constant 0 : index
    %c0_25 = arith.constant 0 : index
    %23 = vector.load %arg5[%c2_23, %c0_24, %c0_25] : memref<3x1x32xf32, #tpu.memory_space<vmem>>, vector<1x1x32xf32>
    %24 = vector.shape_cast %23 : vector<1x1x32xf32> to vector<1x32xf32>
    %25 = vector.broadcast %24 : vector<1x32xf32> to vector<8x32xf32>
    %26 = arith.addf %22, %25 : vector<8x32xf32>
    %27 = vector.extract_strided_slice %8 {offsets = [0, 0], sizes = [8, 8], strides = [1, 1]} : vector<8x32xf32> to vector<8x8xf32>
    %28 = vector.extract_strided_slice %8 {offsets = [0, 8], sizes = [8, 8], strides = [1, 1]} : vector<8x32xf32> to vector<8x8xf32>
    %29 = vector.extract_strided_slice %8 {offsets = [0, 16], sizes = [8, 8], strides = [1, 1]} : vector<8x32xf32> to vector<8x8xf32>
    %30 = vector.extract_strided_slice %8 {offsets = [0, 24], sizes = [8, 8], strides = [1, 1]} : vector<8x32xf32> to vector<8x8xf32>
    %31 = tpu.concatenate %27, %28, %29, %30 in 0 : vector<8x8xf32>, vector<8x8xf32>, vector<8x8xf32>, vector<8x8xf32> -> vector<32x8xf32>
    %32 = vector.shape_cast %31 : vector<32x8xf32> to vector<4x8x8xf32>
    %33 = vector.extract_strided_slice %17 {offsets = [0, 0], sizes = [8, 8], strides = [1, 1]} : vector<8x32xf32> to vector<8x8xf32>
    %34 = vector.extract_strided_slice %17 {offsets = [0, 8], sizes = [8, 8], strides = [1, 1]} : vector<8x32xf32> to vector<8x8xf32>
    %35 = vector.extract_strided_slice %17 {offsets = [0, 16], sizes = [8, 8], strides = [1, 1]} : vector<8x32xf32> to vector<8x8xf32>
    %36 = vector.extract_strided_slice %17 {offsets = [0, 24], sizes = [8, 8], strides = [1, 1]} : vector<8x32xf32> to vector<8x8xf32>
    %37 = tpu.concatenate %33, %34, %35, %36 in 0 : vector<8x8xf32>, vector<8x8xf32>, vector<8x8xf32>, vector<8x8xf32> -> vector<32x8xf32>
    %38 = vector.shape_cast %37 : vector<32x8xf32> to vector<4x8x8xf32>
    %39 = vector.extract_strided_slice %26 {offsets = [0, 0], sizes = [8, 8], strides = [1, 1]} : vector<8x32xf32> to vector<8x8xf32>
    %40 = vector.extract_strided_slice %26 {offsets = [0, 8], sizes = [8, 8], strides = [1, 1]} : vector<8x32xf32> to vector<8x8xf32>
    %41 = vector.extract_strided_slice %26 {offsets = [0, 16], sizes = [8, 8], strides = [1, 1]} : vector<8x32xf32> to vector<8x8xf32>
    %42 = vector.extract_strided_slice %26 {offsets = [0, 24], sizes = [8, 8], strides = [1, 1]} : vector<8x32xf32> to vector<8x8xf32>
    %43 = tpu.concatenate %39, %40, %41, %42 in 0 : vector<8x8xf32>, vector<8x8xf32>, vector<8x8xf32>, vector<8x8xf32> -> vector<32x8xf32>
    %44 = vector.shape_cast %43 : vector<32x8xf32> to vector<4x8x8xf32>
    "tpu.trace_start"() <{level = 10 : i32, message = "nqd,nkd->nqk"}> : () -> ()
    %cst_26 = arith.constant dense<0.000000e+00> : vector<4x8x8xf32>
    %45 = tpu.matmul %32, %38, %cst_26 {dimension_numbers = #tpu.dot_dimension_numbers<[2], [2], [1], [1], [0, 0, 0, 1, 1, 1], [0], [0]>} : vector<4x8x8xf32>, vector<4x8x8xf32>, vector<4x8x8xf32> -> vector<4x8x8xf32>
    "tpu.trace_stop"() : () -> ()
    %cst_27 = arith.constant dense<0xFF800000> : vector<4x8xf32>
    %46 = vector.multi_reduction <maximumf>, %45, %cst_27 [2] : vector<4x8x8xf32> to vector<4x8xf32>
    %47 = vector.shape_cast %46 : vector<4x8xf32> to vector<4x8x1xf32>
    %48 = vector.broadcast %47 : vector<4x8x1xf32> to vector<4x8x8xf32>
    %49 = arith.subf %45, %48 : vector<4x8x8xf32>
    %50 = math.exp %49 : vector<4x8x8xf32>
    %cst_28 = arith.constant dense<0.000000e+00> : vector<4x8xf32>
    %51 = vector.multi_reduction <add>, %50, %cst_28 [2] : vector<4x8x8xf32> to vector<4x8xf32>
    %52 = vector.shape_cast %51 : vector<4x8xf32> to vector<4x8x1xf32>
    %53 = tpu.reciprocal %52 {approx = true} : vector<4x8x1xf32> -> vector<4x8x1xf32>
    %54 = vector.broadcast %53 : vector<4x8x1xf32> to vector<4x8x8xf32>
    %55 = arith.mulf %50, %54 : vector<4x8x8xf32>
    "tpu.trace_start"() <{level = 10 : i32, message = "nqk,nkd->nqd"}> : () -> ()
    %cst_29 = arith.constant dense<0.000000e+00> : vector<4x8x8xf32>
    %56 = tpu.matmul %55, %44, %cst_29 {dimension_numbers = #tpu.dot_dimension_numbers<[2], [1], [1], [2], [0, 0, 0, 1, 1, 2], [0], [0]>} : vector<4x8x8xf32>, vector<4x8x8xf32>, vector<4x8x8xf32> -> vector<4x8x8xf32>
    %cst_30 = arith.constant 0.000000e+00 : f32
    "tpu.trace_stop"() : () -> ()
    %57 = vector.broadcast %cst_30 : f32 to vector<8x128xf32>
    %58 = vector.extract_strided_slice %56 {offsets = [0, 0, 0], sizes = [1, 8, 8], strides = [1, 1, 1]} : vector<4x8x8xf32> to vector<1x8x8xf32>
    %59 = vector.shape_cast %58 : vector<1x8x8xf32> to vector<8x8xf32>
    %c0_31 = arith.constant 0 : index
    %c0_32 = arith.constant 0 : index
    %c0_33 = arith.constant 0 : index
    %60 = vector.load %arg6[%c0_31, %c0_32, %c0_33] : memref<4x8x128xf32, #tpu.memory_space<vmem>>, vector<1x8x128xf32>
    %61 = vector.shape_cast %60 : vector<1x8x128xf32> to vector<8x128xf32>
    %cst_34 = arith.constant dense<0.000000e+00> : vector<8x128xf32>
    %62 = tpu.matmul %59, %61, %cst_34 {dimension_numbers = #tpu.dot_dimension_numbers<[1], [0], [0], [1], [0, 0, 1, 1], [], []>} : vector<8x8xf32>, vector<8x128xf32>, vector<8x128xf32> -> vector<8x128xf32>
    %63 = arith.addf %57, %62 : vector<8x128xf32>
    %64 = vector.extract_strided_slice %56 {offsets = [1, 0, 0], sizes = [1, 8, 8], strides = [1, 1, 1]} : vector<4x8x8xf32> to vector<1x8x8xf32>
    %65 = vector.shape_cast %64 : vector<1x8x8xf32> to vector<8x8xf32>
    %c1_35 = arith.constant 1 : index
    %c0_36 = arith.constant 0 : index
    %c0_37 = arith.constant 0 : index
    %66 = vector.load %arg6[%c1_35, %c0_36, %c0_37] : memref<4x8x128xf32, #tpu.memory_space<vmem>>, vector<1x8x128xf32>
    %67 = vector.shape_cast %66 : vector<1x8x128xf32> to vector<8x128xf32>
    %cst_38 = arith.constant dense<0.000000e+00> : vector<8x128xf32>
    %68 = tpu.matmul %65, %67, %cst_38 {dimension_numbers = #tpu.dot_dimension_numbers<[1], [0], [0], [1], [0, 0, 1, 1], [], []>} : vector<8x8xf32>, vector<8x128xf32>, vector<8x128xf32> -> vector<8x128xf32>
    %69 = arith.addf %63, %68 : vector<8x128xf32>
    %70 = vector.extract_strided_slice %56 {offsets = [2, 0, 0], sizes = [1, 8, 8], strides = [1, 1, 1]} : vector<4x8x8xf32> to vector<1x8x8xf32>
    %71 = vector.shape_cast %70 : vector<1x8x8xf32> to vector<8x8xf32>
    %c2_39 = arith.constant 2 : index
    %c0_40 = arith.constant 0 : index
    %c0_41 = arith.constant 0 : index
    %72 = vector.load %arg6[%c2_39, %c0_40, %c0_41] : memref<4x8x128xf32, #tpu.memory_space<vmem>>, vector<1x8x128xf32>
    %73 = vector.shape_cast %72 : vector<1x8x128xf32> to vector<8x128xf32>
    %cst_42 = arith.constant dense<0.000000e+00> : vector<8x128xf32>
    %74 = tpu.matmul %71, %73, %cst_42 {dimension_numbers = #tpu.dot_dimension_numbers<[1], [0], [0], [1], [0, 0, 1, 1], [], []>} : vector<8x8xf32>, vector<8x128xf32>, vector<8x128xf32> -> vector<8x128xf32>
    %75 = arith.addf %69, %74 : vector<8x128xf32>
    %76 = vector.extract_strided_slice %56 {offsets = [3, 0, 0], sizes = [1, 8, 8], strides = [1, 1, 1]} : vector<4x8x8xf32> to vector<1x8x8xf32>
    %77 = vector.shape_cast %76 : vector<1x8x8xf32> to vector<8x8xf32>
    %c3 = arith.constant 3 : index
    %c0_43 = arith.constant 0 : index
    %c0_44 = arith.constant 0 : index
    %78 = vector.load %arg6[%c3, %c0_43, %c0_44] : memref<4x8x128xf32, #tpu.memory_space<vmem>>, vector<1x8x128xf32>
    %79 = vector.shape_cast %78 : vector<1x8x128xf32> to vector<8x128xf32>
    %cst_45 = arith.constant dense<0.000000e+00> : vector<8x128xf32>
    %80 = tpu.matmul %77, %79, %cst_45 {dimension_numbers = #tpu.dot_dimension_numbers<[1], [0], [0], [1], [0, 0, 1, 1], [], []>} : vector<8x8xf32>, vector<8x128xf32>, vector<8x128xf32> -> vector<8x128xf32>
    %81 = arith.addf %75, %80 : vector<8x128xf32>
    %c0_46 = arith.constant 0 : index
    %c0_47 = arith.constant 0 : index
    %82 = vector.load %arg7[%c0_46, %c0_47] : memref<1x128xf32, #tpu.memory_space<vmem>>, vector<1x128xf32>
    %83 = vector.broadcast %82 : vector<1x128xf32> to vector<8x128xf32>
    %84 = arith.addf %81, %83 : vector<8x128xf32>
    %85 = vector.shape_cast %84 : vector<8x128xf32> to vector<1x8x128xf32>
    %c0_48 = arith.constant 0 : index
    %c0_49 = arith.constant 0 : index
    %c0_50 = arith.constant 0 : index
    %86 = vector.load %arg8[%c0_48, %c0_49, %c0_50] : memref<1x8x128xf32, #tpu.memory_space<vmem>>, vector<1x8x128xf32>
    tpu.vector_store %arg8[%c0_48, %c0_49, %c0_50], %85 {strides = array<i32>} : memref<1x8x128xf32, #tpu.memory_space<vmem>>, vector<1x8x128xf32>,
    return
  }
  func.func @transform_0(%arg0: i32) -> (i32, i32, i32) {
    %c0_i32 = arith.constant 0 : i32
    %c0_i32_0 = arith.constant 0 : i32
    %c0_i32_1 = arith.constant 0 : i32
    return %arg0, %c0_i32, %c0_i32_0 : i32, i32, i32
  }
  func.func @transform_1(%arg0: i32) -> (i32, i32, i32) {
    %c0_i32 = arith.constant 0 : i32
    %c0_i32_0 = arith.constant 0 : i32
    %c0_i32_1 = arith.constant 0 : i32
    return %arg0, %c0_i32, %c0_i32_0 : i32, i32, i32
  }
  func.func @transform_2(%arg0: i32) -> (i32, i32, i32) {
    %c0_i32 = arith.constant 0 : i32
    %c0_i32_0 = arith.constant 0 : i32
    %c0_i32_1 = arith.constant 0 : i32
    return %arg0, %c0_i32, %c0_i32_0 : i32, i32, i32
  }
  func.func @transform_3(%arg0: i32) -> (i32, i32, i32) {
    %c0_i32 = arith.constant 0 : i32
    %c0_i32_0 = arith.constant 0 : i32
    %c0_i32_1 = arith.constant 0 : i32
    %c0_i32_2 = arith.constant 0 : i32
    return %c0_i32, %c0_i32_0, %c0_i32_1 : i32, i32, i32
  }
  func.func @transform_4(%arg0: i32) -> (i32, i32, i32) {
    %c0_i32 = arith.constant 0 : i32
    %c0_i32_0 = arith.constant 0 : i32
    %c0_i32_1 = arith.constant 0 : i32
    %c0_i32_2 = arith.constant 0 : i32
    return %c0_i32, %c0_i32_0, %c0_i32_1 : i32, i32, i32
  }
  func.func @transform_5(%arg0: i32) -> (i32, i32, i32) {
    %c0_i32 = arith.constant 0 : i32
    %c0_i32_0 = arith.constant 0 : i32
    %c0_i32_1 = arith.constant 0 : i32
    %c0_i32_2 = arith.constant 0 : i32
    return %c0_i32, %c0_i32_0, %c0_i32_1 : i32, i32, i32
  }
  func.func @transform_6(%arg0: i32) -> (i32, i32) {
    %c0_i32 = arith.constant 0 : i32
    %c0_i32_0 = arith.constant 0 : i32
    %c0_i32_1 = arith.constant 0 : i32
    return %c0_i32, %c0_i32_0 : i32, i32
  }
  func.func @transform_7(%arg0: i32) -> (i32, i32, i32) {
    %c0_i32 = arith.constant 0 : i32
    %c0_i32_0 = arith.constant 0 : i32
    %c0_i32_1 = arith.constant 0 : i32
    return %arg0, %c0_i32, %c0_i32_0 : i32, i32, i32
  }
}

module attributes {stable_mosaic.version = 11 : i64} {
  func.func @_self_attention_kernel(%arg0: i32, %arg1: memref<1x8x32xf32, #tpu.memory_space<vmem>>, %arg2: memref<1x8x32xf32, #tpu.memory_space<vmem>>, %arg3: memref<1x8x32xf32, #tpu.memory_space<vmem>>, %arg4: memref<3x32x32xf32, #tpu.memory_space<vmem>>, %arg5: memref<3x1x32xf32, #tpu.memory_space<vmem>>, %arg6: memref<4x8x128xf32, #tpu.memory_space<vmem>>, %arg7: memref<1x128xf32, #tpu.memory_space<vmem>>, %arg8: memref<1x8x128xf32, #tpu.memory_space<vmem>>) attributes {dimension_semantics = [#tpu.dimension_semantics<parallel>], iteration_bounds = array<i64: 2>, scalar_prefetch = 0 : i64, scratch_operands = 0 : i64, tpu.core_type = #tpu.core_type<tc>, window_params = [{transform_indices = @transform_0, window_bounds = array<i64: 1, 8, 32>}, {transform_indices = @transform_1, window_bounds = array<i64: 1, 8, 32>}, {transform_indices = @transform_2, window_bounds = array<i64: 1, 8, 32>}, {pipeline_mode = #tpu.pipeline_mode<synchronous>, transform_indices = @transform_3, window_bounds = array<i64: 3, 32, 32>}, {pipeline_mode = #tpu.pipeline_mode<synchronous>, transform_indices = @transform_4, window_bounds = array<i64: 3, 1, 32>}, {pipeline_mode = #tpu.pipeline_mode<synchronous>, transform_indices = @transform_5, window_bounds = array<i64: 4, 8, 128>}, {pipeline_mode = #tpu.pipeline_mode<synchronous>, transform_indices = @transform_6, window_bounds = array<i64: 1, 128>}, {transform_indices = @transform_7, window_bounds = array<i64: 1, 8, 128>}]} {
    %c0 = arith.constant 0 : index
    %c0_0 = arith.constant 0 : index
    %c0_1 = arith.constant 0 : index
    %0 = vector.load %arg1[%c0, %c0_0, %c0_1] : memref<1x8x32xf32, #tpu.memory_space<vmem>>, vector<1x8x32xf32>
    %1 = vector.shape_cast %0 : vector<1x8x32xf32> to vector<8x32xf32>
    %c0_2 = arith.constant 0 : index
    %c0_3 = arith.constant 0 : index
    %c0_4 = arith.constant 0 : index
    %2 = vector.load %arg4[%c0_2, %c0_3, %c0_4] : memref<3x32x32xf32, #tpu.memory_space<vmem>>, vector<1x32x32xf32>
    %3 = vector.shape_cast %2 : vector<1x32x32xf32> to vector<32x32xf32>
    %cst = arith.constant dense<0.000000e+00> : vector<8x32xf32>
    %4 = tpu.matmul %1, %3, %cst {dimension_numbers = #tpu.dot_dimension_numbers<[1], [0], [0], [1], [0, 0, 1, 1], [], []>} : vector<8x32xf32>, vector<32x32xf32>, vector<8x32xf32> -> vector<8x32xf32>
    %c0_5 = arith.constant 0 : index
    %c0_6 = arith.constant 0 : index
    %c0_7 = arith.constant 0 : index
    %5 = vector.load %arg5[%c0_5, %c0_6, %c0_7] : memref<3x1x32xf32, #tpu.memory_space<vmem>>, vector<1x1x32xf32>
    %6 = vector.shape_cast %5 : vector<1x1x32xf32> to vector<1x32xf32>
    %7 = vector.broadcast %6 : vector<1x32xf32> to vector<8x32xf32>
    %8 = arith.addf %4, %7 : vector<8x32xf32>
    %c0_8 = arith.constant 0 : index
    %c0_9 = arith.constant 0 : index
    %c0_10 = arith.constant 0 : index
    %9 = vector.load %arg2[%c0_8, %c0_9, %c0_10] : memref<1x8x32xf32, #tpu.memory_space<vmem>>, vector<1x8x32xf32>
    %10 = vector.shape_cast %9 : vector<1x8x32xf32> to vector<8x32xf32>
    %c1 = arith.constant 1 : index
    %c0_11 = arith.constant 0 : index
    %c0_12 = arith.constant 0 : index
    %11 = vector.load %arg4[%c1, %c0_11, %c0_12] : memref<3x32x32xf32, #tpu.memory_space<vmem>>, vector<1x32x32xf32>
    %12 = vector.shape_cast %11 : vector<1x32x32xf32> to vector<32x32xf32>
    %cst_13 = arith.constant dense<0.000000e+00> : vector<8x32xf32>
    %13 = tpu.matmul %10, %12, %cst_13 {dimension_numbers = #tpu.dot_dimension_numbers<[1], [0], [0], [1], [0, 0, 1, 1], [], []>} : vector<8x32xf32>, vector<32x32xf32>, vector<8x32xf32> -> vector<8x32xf32>
    %c1_14 = arith.constant 1 : index
    %c0_15 = arith.constant 0 : index
    %c0_16 = arith.constant 0 : index
    %14 = vector.load %arg5[%c1_14, %c0_15, %c0_16] : memref<3x1x32xf32, #tpu.memory_space<vmem>>, vector<1x1x32xf32>
    %15 = vector.shape_cast %14 : vector<1x1x32xf32> to vector<1x32xf32>
    %16 = vector.broadcast %15 : vector<1x32xf32> to vector<8x32xf32>
    %17 = arith.addf %13, %16 : vector<8x32xf32>
    %c0_17 = arith.constant 0 : index
    %c0_18 = arith.constant 0 : index
    %c0_19 = arith.constant 0 : index
    %18 = vector.load %arg3[%c0_17, %c0_18, %c0_19] : memref<1x8x32xf32, #tpu.memory_space<vmem>>, vector<1x8x32xf32>
    %19 = vector.shape_cast %18 : vector<1x8x32xf32> to vector<8x32xf32>
    %c2 = arith.constant 2 : index
    %c0_20 = arith.constant 0 : index
    %c0_21 = arith.constant 0 : index
    %20 = vector.load %arg4[%c2, %c0_20, %c0_21] : memref<3x32x32xf32, #tpu.memory_space<vmem>>, vector<1x32x32xf32>
    %21 = vector.shape_cast %20 : vector<1x32x32xf32> to vector<32x32xf32>
    %cst_22 = arith.constant dense<0.000000e+00> : vector<8x32xf32>
    %22 = tpu.matmul %19, %21, %cst_22 {dimension_numbers = #tpu.dot_dimension_numbers<[1], [0], [0], [1], [0, 0, 1, 1], [], []>} : vector<8x32xf32>, vector<32x32xf32>, vector<8x32xf32> -> vector<8x32xf32>
    %c2_23 = arith.constant 2 : index
    %c0_24 = arith.constant 0 : index
    %c0_25 = arith.constant 0 : index
    %23 = vector.load %arg5[%c2_23, %c0_24, %c0_25] : memref<3x1x32xf32, #tpu.memory_space<vmem>>, vector<1x1x32xf32>
    %24 = vector.shape_cast %23 : vector<1x1x32xf32> to vector<1x32xf32>
    %25 = vector.broadcast %24 : vector<1x32xf32> to vector<8x32xf32>
    %26 = arith.addf %22, %25 : vector<8x32xf32>
    %27 = vector.extract_strided_slice %8 {offsets = [0, 0], sizes = [8, 8], strides = [1, 1]} : vector<8x32xf32> to vector<8x8xf32>
    %28 = vector.extract_strided_slice %8 {offsets = [0, 8], sizes = [8, 8], strides = [1, 1]} : vector<8x32xf32> to vector<8x8xf32>
    %29 = vector.extract_strided_slice %8 {offsets = [0, 16], sizes = [8, 8], strides = [1, 1]} : vector<8x32xf32> to vector<8x8xf32>
    %30 = vector.extract_strided_slice %8 {offsets = [0, 24], sizes = [8, 8], strides = [1, 1]} : vector<8x32xf32> to vector<8x8xf32>
    %31 = tpu.concatenate %27, %28, %29, %30 in 0 : vector<8x8xf32>, vector<8x8xf32>, vector<8x8xf32>, vector<8x8xf32> -> vector<32x8xf32>
    %32 = vector.shape_cast %31 : vector<32x8xf32> to vector<4x8x8xf32>
    %33 = vector.extract_strided_slice %17 {offsets = [0, 0], sizes = [8, 8], strides = [1, 1]} : vector<8x32xf32> to vector<8x8xf32>
    %34 = vector.extract_strided_slice %17 {offsets = [0, 8], sizes = [8, 8], strides = [1, 1]} : vector<8x32xf32> to vector<8x8xf32>
    %35 = vector.extract_strided_slice %17 {offsets = [0, 16], sizes = [8, 8], strides = [1, 1]} : vector<8x32xf32> to vector<8x8xf32>
    %36 = vector.extract_strided_slice %17 {offsets = [0, 24], sizes = [8, 8], strides = [1, 1]} : vector<8x32xf32> to vector<8x8xf32>
    %37 = tpu.concatenate %33, %34, %35, %36 in 0 : vector<8x8xf32>, vector<8x8xf32>, vector<8x8xf32>, vector<8x8xf32> -> vector<32x8xf32>
    %38 = vector.shape_cast %37 : vector<32x8xf32> to vector<4x8x8xf32>
    %39 = vector.extract_strided_slice %26 {offsets = [0, 0], sizes = [8, 8], strides = [1, 1]} : vector<8x32xf32> to vector<8x8xf32>
    %40 = vector.extract_strided_slice %26 {offsets = [0, 8], sizes = [8, 8], strides = [1, 1]} : vector<8x32xf32> to vector<8x8xf32>
    %41 = vector.extract_strided_slice %26 {offsets = [0, 16], sizes = [8, 8], strides = [1, 1]} : vector<8x32xf32> to vector<8x8xf32>
    %42 = vector.extract_strided_slice %26 {offsets = [0, 24], sizes = [8, 8], strides = [1, 1]} : vector<8x32xf32> to vector<8x8xf32>
    %43 = tpu.concatenate %39, %40, %41, %42 in 0 : vector<8x8xf32>, vector<8x8xf32>, vector<8x8xf32>, vector<8x8xf32> -> vector<32x8xf32>
    %44 = vector.shape_cast %43 : vector<32x8xf32> to vector<4x8x8xf32>
    "tpu.trace_start"() <{level = 10 : i32, message = "nqd,nkd->nqk"}> : () -> ()
    %cst_26 = arith.constant dense<0.000000e+00> : vector<4x8x8xf32>
    %45 = tpu.matmul %32, %38, %cst_26 {dimension_numbers = #tpu.dot_dimension_numbers<[2], [2], [1], [1], [0, 0, 0, 1, 1, 1], [0], [0]>} : vector<4x8x8xf32>, vector<4x8x8xf32>, vector<4x8x8xf32> -> vector<4x8x8xf32>
    "tpu.trace_stop"() : () -> ()
    %cst_27 = arith.constant dense<0xFF800000> : vector<4x8xf32>
    %46 = vector.multi_reduction <maximumf>, %45, %cst_27 [2] : vector<4x8x8xf32> to vector<4x8xf32>
    %47 = vector.shape_cast %46 : vector<4x8xf32> to vector<4x8x1xf32>
    %48 = vector.broadcast %47 : vector<4x8x1xf32> to vector<4x8x8xf32>
    %49 = arith.subf %45, %48 : vector<4x8x8xf32>
    %50 = math.exp %49 : vector<4x8x8xf32>
    %cst_28 = arith.constant dense<0.000000e+00> : vector<4x8xf32>
    %51 = vector.multi_reduction <add>, %50, %cst_28 [2] : vector<4x8x8xf32> to vector<4x8xf32>
    %52 = vector.shape_cast %51 : vector<4x8xf32> to vector<4x8x1xf32>
    %53 = tpu.reciprocal %52 {approx = true} : vector<4x8x1xf32> -> vector<4x8x1xf32>
    %54 = vector.broadcast %53 : vector<4x8x1xf32> to vector<4x8x8xf32>
    %55 = arith.mulf %50, %54 : vector<4x8x8xf32>
    "tpu.trace_start"() <{level = 10 : i32, message = "nqk,nkd->nqd"}> : () -> ()
    %cst_29 = arith.constant dense<0.000000e+00> : vector<4x8x8xf32>
    %56 = tpu.matmul %55, %44, %cst_29 {dimension_numbers = #tpu.dot_dimension_numbers<[2], [1], [1], [2], [0, 0, 0, 1, 1, 2], [0], [0]>} : vector<4x8x8xf32>, vector<4x8x8xf32>, vector<4x8x8xf32> -> vector<4x8x8xf32>
    %cst_30 = arith.constant 0.000000e+00 : f32
    "tpu.trace_stop"() : () -> ()
    %57 = vector.broadcast %cst_30 : f32 to vector<8x128xf32>
    %58 = vector.extract_strided_slice %56 {offsets = [0, 0, 0], sizes = [1, 8, 8], strides = [1, 1, 1]} : vector<4x8x8xf32> to vector<1x8x8xf32>
    %59 = vector.shape_cast %58 : vector<1x8x8xf32> to vector<8x8xf32>
    %c0_31 = arith.constant 0 : index
    %c0_32 = arith.constant 0 : index
    %c0_33 = arith.constant 0 : index
    %60 = vector.load %arg6[%c0_31, %c0_32, %c0_33] : memref<4x8x128xf32, #tpu.memory_space<vmem>>, vector<1x8x128xf32>
    %61 = vector.shape_cast %60 : vector<1x8x128xf32> to vector<8x128xf32>
    %cst_34 = arith.constant dense<0.000000e+00> : vector<8x128xf32>
    %62 = tpu.matmul %59, %61, %cst_34 {dimension_numbers = #tpu.dot_dimension_numbers<[1], [0], [0], [1], [0, 0, 1, 1], [], []>} : vector<8x8xf32>, vector<8x128xf32>, vector<8x128xf32> -> vector<8x128xf32>
    %63 = arith.addf %57, %62 : vector<8x128xf32>
    %64 = vector.extract_strided_slice %56 {offsets = [1, 0, 0], sizes = [1, 8, 8], strides = [1, 1, 1]} : vector<4x8x8xf32> to vector<1x8x8xf32>
    %65 = vector.shape_cast %64 : vector<1x8x8xf32> to vector<8x8xf32>
    %c1_35 = arith.constant 1 : index
    %c0_36 = arith.constant 0 : index
    %c0_37 = arith.constant 0 : index
    %66 = vector.load %arg6[%c1_35, %c0_36, %c0_37] : memref<4x8x128xf32, #tpu.memory_space<vmem>>, vector<1x8x128xf32>
    %67 = vector.shape_cast %66 : vector<1x8x128xf32> to vector<8x128xf32>
    %cst_38 = arith.constant dense<0.000000e+00> : vector<8x128xf32>
    %68 = tpu.matmul %65, %67, %cst_38 {dimension_numbers = #tpu.dot_dimension_numbers<[1], [0], [0], [1], [0, 0, 1, 1], [], []>} : vector<8x8xf32>, vector<8x128xf32>, vector<8x128xf32> -> vector<8x128xf32>
    %69 = arith.addf %63, %68 : vector<8x128xf32>
    %70 = vector.extract_strided_slice %56 {offsets = [2, 0, 0], sizes = [1, 8, 8], strides = [1, 1, 1]} : vector<4x8x8xf32> to vector<1x8x8xf32>
    %71 = vector.shape_cast %70 : vector<1x8x8xf32> to vector<8x8xf32>
    %c2_39 = arith.constant 2 : index
    %c0_40 = arith.constant 0 : index
    %c0_41 = arith.constant 0 : index
    %72 = vector.load %arg6[%c2_39, %c0_40, %c0_41] : memref<4x8x128xf32, #tpu.memory_space<vmem>>, vector<1x8x128xf32>
    %73 = vector.shape_cast %72 : vector<1x8x128xf32> to vector<8x128xf32>
    %cst_42 = arith.constant dense<0.000000e+00> : vector<8x128xf32>
    %74 = tpu.matmul %71, %73, %cst_42 {dimension_numbers = #tpu.dot_dimension_numbers<[1], [0], [0], [1], [0, 0, 1, 1], [], []>} : vector<8x8xf32>, vector<8x128xf32>, vector<8x128xf32> -> vector<8x128xf32>
    %75 = arith.addf %69, %74 : vector<8x128xf32>
    %76 = vector.extract_strided_slice %56 {offsets = [3, 0, 0], sizes = [1, 8, 8], strides = [1, 1, 1]} : vector<4x8x8xf32> to vector<1x8x8xf32>
    %77 = vector.shape_cast %76 : vector<1x8x8xf32> to vector<8x8xf32>
    %c3 = arith.constant 3 : index
    %c0_43 = arith.constant 0 : index
    %c0_44 = arith.constant 0 : index
    %78 = vector.load %arg6[%c3, %c0_43, %c0_44] : memref<4x8x128xf32, #tpu.memory_space<vmem>>, vector<1x8x128xf32>
    %79 = vector.shape_cast %78 : vector<1x8x128xf32> to vector<8x128xf32>
    %cst_45 = arith.constant dense<0.000000e+00> : vector<8x128xf32>
    %80 = tpu.matmul %77, %79, %cst_45 {dimension_numbers = #tpu.dot_dimension_numbers<[1], [0], [0], [1], [0, 0, 1, 1], [], []>} : vector<8x8xf32>, vector<8x128xf32>, vector<8x128xf32> -> vector<8x128xf32>
    %81 = arith.addf %75, %80 : vector<8x128xf32>
    %c0_46 = arith.constant 0 : index
    %c0_47 = arith.constant 0 : index
    %82 = vector.load %arg7[%c0_46, %c0_47] : memref<1x128xf32, #tpu.memory_space<vmem>>, vector<1x128xf32>
    %83 = vector.broadcast %82 : vector<1x128xf32> to vector<8x128xf32>
    %84 = arith.addf %81, %83 : vector<8x128xf32>
    %85 = vector.shape_cast %84 : vector<8x128xf32> to vector<1x8x128xf32>
    %c0_48 = arith.constant 0 : index
    %c0_49 = arith.constant 0 : index
    %c0_50 = arith.constant 0 : index
    %86 = vector.load %arg8[%c0_48, %c0_49, %c0_50] : memref<1x8x128xf32, #tpu.memory_space<vmem>>, vector<1x8x128xf32>
    tpu.vector_store %arg8[%c0_48, %c0_49, %c0_50], %85 {strides = array<i32>} : memref<1x8x128xf32, #tpu.memory_space<vmem>>, vector<1x8x128xf32>,
    return
  }
  func.func @transform_0(%arg0: i32) -> (i32, i32, i32) {
    %c0_i32 = arith.constant 0 : i32
    %c0_i32_0 = arith.constant 0 : i32
    %c0_i32_1 = arith.constant 0 : i32
    return %arg0, %c0_i32, %c0_i32_0 : i32, i32, i32
  }
  func.func @transform_1(%arg0: i32) -> (i32, i32, i32) {
    %c0_i32 = arith.constant 0 : i32
    %c0_i32_0 = arith.constant 0 : i32
    %c0_i32_1 = arith.constant 0 : i32
    return %arg0, %c0_i32, %c0_i32_0 : i32, i32, i32
  }
  func.func @transform_2(%arg0: i32) -> (i32, i32, i32) {
    %c0_i32 = arith.constant 0 : i32
    %c0_i32_0 = arith.constant 0 : i32
    %c0_i32_1 = arith.constant 0 : i32
    return %arg0, %c0_i32, %c0_i32_0 : i32, i32, i32
  }
  func.func @transform_3(%arg0: i32) -> (i32, i32, i32) {
    %c0_i32 = arith.constant 0 : i32
    %c0_i32_0 = arith.constant 0 : i32
    %c0_i32_1 = arith.constant 0 : i32
    %c0_i32_2 = arith.constant 0 : i32
    return %c0_i32, %c0_i32_0, %c0_i32_1 : i32, i32, i32
  }
  func.func @transform_4(%arg0: i32) -> (i32, i32, i32) {
    %c0_i32 = arith.constant 0 : i32
    %c0_i32_0 = arith.constant 0 : i32
    %c0_i32_1 = arith.constant 0 : i32
    %c0_i32_2 = arith.constant 0 : i32
    return %c0_i32, %c0_i32_0, %c0_i32_1 : i32, i32, i32
  }
  func.func @transform_5(%arg0: i32) -> (i32, i32, i32) {
    %c0_i32 = arith.constant 0 : i32
    %c0_i32_0 = arith.constant 0 : i32
    %c0_i32_1 = arith.constant 0 : i32
    %c0_i32_2 = arith.constant 0 : i32
    return %c0_i32, %c0_i32_0, %c0_i32_1 : i32, i32, i32
  }
  func.func @transform_6(%arg0: i32) -> (i32, i32) {
    %c0_i32 = arith.constant 0 : i32
    %c0_i32_0 = arith.constant 0 : i32
    %c0_i32_1 = arith.constant 0 : i32
    return %c0_i32, %c0_i32_0 : i32, i32
  }
  func.func @transform_7(%arg0: i32) -> (i32, i32, i32) {
    %c0_i32 = arith.constant 0 : i32
    %c0_i32_0 = arith.constant 0 : i32
    %c0_i32_1 = arith.constant 0 : i32
    return %arg0, %c0_i32, %c0_i32_0 : i32, i32, i32
  }
}

</mosaic_0001>

<bundles_post_ra>
// kernel: tpu_custom_call.1
= control target key start
LH: loop header
LB: loop body
LE: loop exit
PB: predicated region body
PF: predicated region fallthrough
CT: control target
= control target key end

     0   :  { %s1699_s0 = inlined_call_operand.hbm [shape: f32[2,8,32], index: 0, kind: input, shape index: {}]   ;;  %s1700_s1 = inlined_call_operand.hbm [shape: f32[2,8,32], index: 1, kind: input, shape index: {}]   ;;  %s1701_s2 = inlined_call_operand.hbm [shape: f32[2,8,32], index: 2, kind: input, shape index: {}]   ;;  %s1702_s3 = inlined_call_operand.hbm [shape: f32[3,32,32], index: 3, kind: input, shape index: {}]   ;;  %s1703_s4 = inlined_call_operand.vmem [shape: f32[3,1,32], index: 4, kind: input, shape index: {}]   ;;  %s1704_s5 = inlined_call_operand.hbm [shape: f32[4,8,128], index: 5, kind: input, shape index: {}]   ;;  %s1705_s6 = inlined_call_operand.vmem [shape: f32[1,128], index: 6, kind: input, shape index: {}]   ;;  %s1706_s7 = inlined_call_operand.hbm [shape: f32[2,8,128], index: 7, kind: output, shape index: {}]  }
   0x1   :  { %1716 = sst [smem:[#allocation21_spill]] %s1700_s1 }
   0x2   :  { %1717 = sst [smem:[#allocation22_spill]] %s1702_s3 }
   0x3   :  { %12 = vsyncpa [#allocation3], 0 }
   0x4   :  { %14 = vsyncpa [#allocation3 + $0x1], 0 }
   0x5   :  { %15 = vsyncpa [#allocation6], 0 }
   0x6   :  { %17 = vsyncpa [#allocation6 + $0x1], 0 }
   0x7   :  { %18 = vsyncpa [#allocation9], 0 }
   0x8   :  { %19 = vsyncpa [#allocation4], 0 }
   0x9   :  { %21 = vsyncpa [#allocation4 + $0x1], 0  ;;  %s1435_s24 = smov 0   ;;  %s1437_s25 = smov 0  }
   0xa   :  { %s1439_s26 = smov 0   ;;  %s1441_s27 = smov 0  }
   0xb LB: > { %1718 = sst [smem:[#allocation16_spill]] %s1374_s24  ;;  %s1459_s8 = sadd.s32 4294967295, %s1386_s27   ;;  %s1386_s27 = sphi %s1441_s27, %s1740_s27   ;;  %s1382_s26 = sphi %s1439_s26, %s1744_s26   ;;  %s1378_s25 = sphi %s1437_s25, %s1743_s25   ;;  %s1374_s24 = sphi %s1435_s24, %s1742_s24  }
   0xc   : > { %1719 = sst [smem:[#allocation17_spill]] %s1386_s27  ;;  %p1018_p0 = scmp.ge.s32.totalorder %s1386_s27, 1 }
   0xd   : > { %s1720_s3 = sld [smem:[#allocation22_spill]]  ;;  %p1715_p1 = scmp.eq.s32.totalorder %s1459_s8, 0 }
   0xe   : > { %p220_p2 = scmp.lt.s32.totalorder %s1386_s27, 3  ;;  %s1388_s10 = smov [#allocation8]  }
   0xf   : > { %s233_s11 = sshll.u32 %s1388_s10, 4  ;;  %s1707_s13 = smov 128   ;;  %s234_s11 = int_to_ptr.vmem [resolvable:$true] %s233_s11 }
  0x10   : > { %p1464_p3 = pnand %p1018_p0, %p220_p2  ;;  %s1708_s14 = smov 8  }
  0x11   : > { %s1017_s15 = sadd.s32 4294967294, %s1386_s27   ;;  %s1484_s16 = sadd.s32 1, %s1386_s27  }
  0x12   : > { %p1076_p4 = pneg %p1464_p3  ;;  %1723 = sst [smem:[#allocation18_spill]] %s1484_s16 }
  0x13   : > { %s231_s30 = sshll.u32 %s1720_s3, 4  ;;  %s34_s17 = sadd.s32 1, %s1382_s26  ;;  %s232_s30 = int_to_ptr.hbm [resolvable:$true] %s231_s30 }
  0x14   : > { %p1473_p6 = pnand %p1076_p4, %p1715_p1  ;;  %s31_s18 = ssub.s32 %s1386_s27, %s1484_s16 }
  0x15   : > { %p41_p7 = scmp.ne.s32.totalorder %s1382_s26, %s1378_s25  ;;  %p32_p8 = scmp.eq.s32.totalorder %s31_s18, 0 }
  0x16   : > { %1079 = dma.hbm_to_vmem [thread:$0]  (!%p1473_p6), %s232_s30, 1536, %s234_s11, [#allocation9], %s1707_s13, %s1707_s13, %s1708_s14  }
  0x17   : > { %p42_p9 = scmp.eq.s32.totalorder %s1386_s27, 0  ;;  %p47_p10 = scmp.ne.s32.totalorder %s1378_s25, %s1374_s24 }
  0x18   : > { %p207_p11 = scmp.eq.s32.totalorder %s1459_s8, 1  ;;  %p213_p2 = scmp.eq.s32.totalorder %s1017_s15, 1 }
  0x19   : > { %s1496_s19 = scalar_select %p32_p8, %s1382_s26, %s34_s17  }
  0x1a   : > { %p43_p12 = por %p42_p9, %p41_p7  ;;  %p1500_p13 = por %p1715_p1, %p47_p10 }
  0x1b   : > { %1724 = sst [smem:[#allocation19_spill]] %s1496_s19  ;;  %p1504_p0 = por %p207_p11, %p41_p7 }
  0x1c   : > { %p1099_p4 = scmp.lt.s32.totalorder %s1386_s27, 2  ;;  %s1709_s22 = sand.u32 1, %s1382_s26  }
  0x1d   : > { %p1510_p5 = por %p213_p2, %p47_p10  ;;  %s1516_s28 = sshll.u32 %s1709_s22, 3 }
  0x1e   : > { %s1519_s29 = sshll.u32 %s1386_s27, 3  ;;  %p1521_p8 = pnand %p1099_p4, %p43_p12 }
  0x1f   : > { %s1727_s23 = scalar_select %p1510_p5, 1, 0 }
  0x20   : > { %s286_s10 = sand.u32 1, %s1386_s27   ;;  %s1730_s1 = sld [smem:[#allocation21_spill]] }
  0x21   : > { %1728 = sst [smem:[#allocation20_spill]] %s1727_s23  ;;  %s290_s18 = scalar_lea.vmem [#allocation5], %s1516_s28 }
  0x22   : > { %s298_s13 = sshll.u32 %s290_s18, 4  ;;  %s248_s19 = sshll.u32 %s1704_s5, 4  ;;  %s299_s13 = int_to_ptr.vmem [resolvable:$true] %s298_s13  ;;  %s249_s19 = int_to_ptr.hbm [resolvable:$true] %s248_s19 }
  0x23   : > { %s1534_s16 = scalar_lea.sflag [#allocation6], %s286_s10  ;;  %p1196_p9 = pneg %p1521_p8 }
  0x26   : > { %s294_s17 = scalar_lea.hbm %s1730_s1, %s1519_s29 }
  0x27   : > { %s296_s14 = sshll.u32 %s294_s17, 4  ;;  %s1199_s17 = scalar_lea.hbm %s1730_s1, 16  ;;  %s297_s14 = int_to_ptr.hbm [resolvable:$true] %s296_s14 }
  0x28   : > { %s1192_s23 = sshra.s32 %s297_s14, 4  ;;  %s1193_s23 = int_to_ptr.hbm [resolvable:$true] %s1192_s23 }
  0x29   : > { %s1194_s24 = scalar_lea.hbm %s1193_s23, 8  ;;  %p1200_p12 = scmp.lt.s32.totalorder %s1193_s23, %s1730_s1 }
  0x2a   : > { %p1195_p7 = scmp.ne.s32.totalorder %s1193_s23, %s1194_s24  ;;  %p1201_p2 = scmp.lt.s32.totalorder %s1199_s17, %s1194_s24 }
  0x2c   : > { %p1197_p10 = pnand %p1196_p9, %p1195_p7  ;;  %p1202_p4 = por %p1201_p2, %p1200_p12 }
  0x2e   : > { %p1198_p11 = pneg %p1197_p10 }
  0x30   : > { %p1203_p1 = pnand %p1202_p4, %p1198_p11 }
  0x32   : > { %1206 = shalt.err (!%p1203_p1)
}
  0x33   : > { %1089 = dma.hbm_to_vmem [thread:$0]  (!%p1521_p8), %s297_s14, 128, %s299_s13, %s1534_s16  }
  0x34   : > { %s1391_s3 = smov [#allocation10]   ;;  %s1731_s27 = smov 8  }
  0x35   : > { %s250_s22 = sshll.u32 %s1391_s3, 4  ;;  %s1732_s23 = smov 128   ;;  %s251_s22 = int_to_ptr.vmem [resolvable:$true] %s250_s22 }
  0x36   : > { %1082 = dma.hbm_to_vmem [thread:$0]  (!%p1473_p6), %s249_s19, 512, %s251_s22, [#allocation9], %s1732_s23, %s1732_s23, %s1731_s27  }
  0x37   : > { %s275_s11 = scalar_lea.hbm %s1699_s0, %s1519_s29  ;;  %s271_s15 = scalar_lea.vmem [#allocation2], %s1516_s28 }
  0x38   : > { %s279_s17 = sshll.u32 %s271_s15, 4  ;;  %s277_s18 = sshll.u32 %s275_s11, 4  ;;  %s280_s17 = int_to_ptr.vmem [resolvable:$true] %s279_s17  ;;  %s278_s18 = int_to_ptr.hbm [resolvable:$true] %s277_s18 }
  0x39   : > { %s1733_s13 = sand.u32 1, %s1382_s26   ;;  %s1252_s1 = sshra.s32 %s278_s18, 4  ;;  %s1253_s1 = int_to_ptr.hbm [resolvable:$true] %s1252_s1 }
  0x3a   : > { %s268_s14 = scalar_lea.sflag [#allocation3], %s1733_s13  ;;  %s1254_s3 = scalar_lea.hbm %s1253_s1, 8 }
  0x3b   : > { %p1255_p1 = scmp.ne.s32.totalorder %s1253_s1, %s1254_s3  ;;  %s1259_s22 = scalar_lea.hbm %s1699_s0, 16 }
  0x3c   : > { %p1260_p6 = scmp.lt.s32.totalorder %s1253_s1, %s1699_s0  ;;  %p1261_p11 = scmp.lt.s32.totalorder %s1259_s22, %s1254_s3 }
  0x3d   : > { %p1257_p7 = pnand %p1255_p1, %p1196_p9 }
  0x3e   : > { %p1262_p12 = por %p1261_p11, %p1260_p6 }
  0x3f   : > { %p1258_p10 = pneg %p1257_p7 }
  0x41   : > { %p1263_p2 = pnand %p1262_p12, %p1258_p10 }
  0x43   : > { %1266 = shalt.err (!%p1263_p2)
}
  0x44   : > { %1086 = dma.hbm_to_vmem [thread:$0]  (!%p1521_p8), %s278_s18, 128, %s280_s17, %s268_s14  }
  0x45   : > { %s313_s11 = scalar_lea.hbm %s1701_s2, %s1519_s29  ;;  %s309_s15 = scalar_lea.vmem [#allocation7], %s1516_s28 }
  0x46   : > { %s317_s13 = sshll.u32 %s309_s15, 4  ;;  %s315_s12 = sshll.u32 %s313_s11, 4  ;;  %s318_s13 = int_to_ptr.vmem [resolvable:$true] %s317_s13  ;;  %s316_s12 = int_to_ptr.hbm [resolvable:$true] %s315_s12 }
  0x47   : > { %s1282_s1 = sshra.s32 %s316_s12, 4  ;;  %s1289_s17 = scalar_lea.hbm %s1701_s2, 16  ;;  %s1283_s1 = int_to_ptr.hbm [resolvable:$true] %s1282_s1 }
  0x48   : > { %s1284_s3 = scalar_lea.hbm %s1283_s1, 8  ;;  %p1290_p10 = scmp.lt.s32.totalorder %s1283_s1, %s1701_s2 }
  0x49   : > { %p1285_p4 = scmp.ne.s32.totalorder %s1283_s1, %s1284_s3  ;;  %p1291_p6 = scmp.lt.s32.totalorder %s1289_s17, %s1284_s3 }
  0x4b   : > { %p1287_p1 = pnand %p1285_p4, %p1196_p9  ;;  %p1292_p11 = por %p1291_p6, %p1290_p10 }
  0x4d   : > { %p1288_p7 = pneg %p1287_p1 }
  0x4f   : > { %p1293_p12 = pnand %p1292_p11, %p1288_p7 }
  0x51   : > { %1296 = shalt.err (!%p1293_p12)
}
  0x52   : > { %1092 = dma.hbm_to_vmem [thread:$0]  (!%p1521_p8), %s316_s12, 128, %s318_s13, %s1534_s16  }
  0x53   : > { %326 = sbr.rel (%p1464_p3) target bundleno = 1020 (0x3fc), region = 48  ;;  %s1593_s28 = sand.u32 (!%p1464_p3), 1, %s1378_s25  }
  0x54   : > { %s1596_s29 = sshll.u32 (!%p1464_p3), %s1593_s28, 3  ;;  %s329_s27 = scalar_lea.sflag (!%p1464_p3), [#allocation3], %s1593_s28 }
  0x55   : > { %s332_s23 = scalar_lea.vmem (!%p1464_p3), [#allocation2], %s1596_s29 }
  0x58   : > { %1357 = dma.done.wait (%p1500_p13), %s329_s27, 128  }
  0x59   : > { %1359 = vsyncadd (%p1500_p13), %s329_s27, 4294967168  ;;  %s338_s9 = sand.u32 1, %s1459_s8   ;;  %s342_s30 = scalar_lea.vmem [#allocation5], %s1596_s29 }
  0x5a   : > { %s339_s16 = scalar_lea.sflag [#allocation6], %s338_s9 }
  0x5b   : > { %1361 = dma.done.wait (%p1500_p13), %s339_s16, 256  }
  0x5c   : > { %1363 = vsyncadd (%p1500_p13), %s339_s16, 4294967040  ;;  %s352_s24 = scalar_lea.vmem [#allocation7], %s1596_s29  ;;  %p1734_p3 = scmp.eq.s32.totalorder %s1459_s8, 0 }
  0x5e   : > { %1365 = dma.done.wait (%p1734_p3), [#allocation9], 2048   ;;  %p1735_p8 = pmov %p1734_p3 }
  0x5f   : > { %v442_v0 = vld [vmem:[#allocation8 + $0x38] sm:$0xff]  ;;  %v441_v1 = vld [vmem:[#allocation8 + $0x30] sm:$0xff]  ;;  %v440_v4 = vld [vmem:[#allocation8 + $0x28] sm:$0xff]  ;;  %vm413_vm0 = vcmask 261120   ;;  %vm529_vm1 = vcmask 64512   ;;  %s1392_s13 = smov 112  }
  0x60   : > { %1367 = vsyncadd (%p1735_p8), [#allocation9], 4294965248  ;;  %v408_v2 = vld [vmem:[#allocation8 + $0x18] sm:$0xff]  ;;  %463 = vmatpush.msra.mxu1 %v442_v0  ;;  %v407_v3 = vld [vmem:[#allocation8 + $0x10] sm:$0xff]  ;;  %s1393_s12 = smov 120   ;;  %s1394_s1 = smov 104  }
  0x61   : > { %429 = vmatpush.msra.mxu0 %v408_v2  ;;  %v406_v5 = vld [vmem:[#allocation8 + $0x8] sm:$0xff]  ;;  %v439_v6 = vld [vmem:[#allocation8 + $0x20] sm:$0xff]  ;;  %v404_v9 = vld [vmem:[%s332_s23] sm:$0xff]  ;;  %s1057_s22 = sshll.u32 %s1459_s8, 3  ;;  %s403_s9 = scalar_lea.vmem [#allocation11], %s1596_s29 }
  0x62   : > { %464 = vmatpush.msra.mxu1 %v441_v1  ;;  %v405_v7 = vld [vmem:[#allocation8] sm:$0xff]  ;;  %v1142_v10 = vld [vmem:[%s1703_s4 + $0x1] ss:$0 sm:$0xff]  ;;  %v1143_v11 = vld [vmem:[%s1703_s4] ss:$0 sm:$0xff]  ;;  %s880_s14 = scalar_lea.hbm %s1706_s7, %s1057_s22  ;;  %s882_s16 = sshll.u32 %s403_s9, 4  ;;  %s883_s16 = int_to_ptr.vmem [resolvable:$true] %s882_s16 }
  0x63   : > { %430 = vmatpush.msra.mxu0 %v407_v3  ;;  %v437_v8 = vld [vmem:[%s342_s30] sm:$0xff]  ;;  %v476_v24 = vld [vmem:[#allocation8 + $0x58] sm:$0xff]  ;;  %v475_v25 = vld [vmem:[#allocation8 + $0x50] sm:$0xff]  ;;  %s884_s30 = sshll.u32 %s880_s14, 4  ;;  %s870_s8 = scalar_lea.sflag [#allocation4], %s1593_s28  ;;  %s885_s30 = int_to_ptr.hbm [resolvable:$true] %s884_s30 }
  0x64   : > { %465 = vmatpush.msra.mxu1 %v440_v4  ;;  %497 = vmatpush.msra.mxu2 %v476_v24  ;;  %v474_v26 = vld [vmem:[#allocation8 + $0x48] sm:$0xff]  ;;  %v473_v27 = vld [vmem:[#allocation8 + $0x40] sm:$0xff]  ;;  %v471_v28 = vld [vmem:[%s352_s24] sm:$0xff]  ;;  %s1326_s24 = sshra.s32 %s885_s30, 4  ;;  %s1332_s15 = scalar_lea.hbm %s1706_s7, 16  ;;  %s1327_s24 = int_to_ptr.hbm [resolvable:$true] %s1326_s24 }
  0x65   : > { %431 = vmatpush.msra.mxu0 %v406_v5  ;;  %v1144_v40 = vld [vmem:[%s1703_s4 + $0x2] ss:$0 sm:$0xff]  ;;  %v762_v62 = vld [vmem:[#allocation10] sm:$0xff]  ;;  %s1328_s20 = scalar_lea.hbm %s1327_s24, 8  ;;  %p1333_p4 = scmp.lt.s32.totalorder %s1327_s24, %s1706_s7 }
  0x66   : > { %466 = vmatpush.msra.mxu1 %v439_v6  ;;  %498 = vmatpush.msra.mxu2 %v475_v25  ;;  %p1329_p13 = scmp.ne.s32.totalorder %s1327_s24, %s1328_s20  ;;  %p1334_p1 = scmp.lt.s32.totalorder %s1332_s15, %s1328_s20 }
  0x67   : > { %432 = vmatpush.msra.mxu0 %v405_v7  ;;  %1037 = vmatmul.msk.f32.vlgmr.msra.gmra.mxu1 %vm413_vm0, %v437_v8 }
  0x68   : > { %1035 = vmatmul.msk.f32.vlgmr.msra.gmra.mxu0 %vm413_vm0, %v404_v9  ;;  %499 = vmatpush.msra.mxu2 %v474_v26  ;;  %p1330_p9 = pnand %p1329_p13, %p1504_p0  ;;  %p1335_p7 = por %p1334_p1, %p1333_p4 }
  0x6a   : > { %500 = vmatpush.msra.mxu2 %v473_v27  ;;  %p1331_p2 = pneg %p1330_p9 }
  0x6b   : > { %1039 = vmatmul.msk.f32.vlgmr.msra.gmra.mxu2 %vm413_vm0, %v471_v28 }
  0x6c   : > { %p1336_p10 = pnand %p1335_p7, %p1331_p2 }
  0xe4   : > { %v468_v12 = vpop.f32.mrf.mxu1 }
  0xe5   : > { %v434_v13 = vpop.f32.mrf.mxu0  ;;  %v469_v14 = vadd.f32 %v1142_v10, %v468_v12  ;;  %v764_v12 = vld [vmem:[#allocation10 + $0x8] sm:$0xff] }
  0xe6   : > { %v435_v15 = vadd.f32 %v1143_v11, %v434_v13  ;;  %v812_v11 = vld [vmem:[#allocation10 + $0x10] sm:$0xff]  ;;  %v838_v13 = vld [vmem:[#allocation10 + $0x18] sm:$0xff] }
  0xe7   : > { %515 = vrot.lane.b32.xlu1 %v469_v14, %s1392_s13  ;;  %513 = vrot.lane.b32.xlu0 %v469_v14, %s1393_s12 }
  0xe8   : > { %1040 = vmatpush.xpose.msk.msra.mxu3 %vm529_vm1, %v469_v14  ;;  %508 = vrot.lane.b32.xlu2 %v435_v15, %s1392_s13 }
  0xeb   : > { %1041 = vmatmul.msk.f32.vlgmr.msra.gmra.mxu3 %vm529_vm1, %v435_v15 }
  0xee   : > { %v502_v41 = vpop.f32.mrf.mxu2 }
  0xef   : > { %517 = vrot.lane.b32.xlu1 %v469_v14, %s1394_s1  ;;  %506 = vrot.lane.b32.xlu0 %v435_v15, %s1393_s12  ;;  %v503_v42 = vadd.f32 %v1144_v40, %v502_v41 }
  0xf0   : > { %510 = vrot.lane.b32.xlu2 %v435_v15, %s1394_s1 }
  0xf1   : > { %688 = vmatpush.msrb.mxu2 %v503_v42 }
  0xf3   : > { %783 = vmatpush.msra.mxu2 %v764_v12 }
 0x142   : > { %v509_v18 = vpop.permute.xlu2 %508 }
 0x14a   : > { %v511_v21 = vpop.permute.xlu2 %510 }
 0x159   : > { %v516_v16 = vpop.permute.xlu1 %515  ;;  %v514_v17 = vpop.permute.xlu0 %513 }
 0x15a   : > { %1042 = vmatpush.xpose.msk.msrb.mxu3 %vm529_vm1, %v514_v17  ;;  %1044 = vmatpush.xpose.msk.msrb.mxu0 %vm529_vm1, %v516_v16 }
 0x15d   : > { %1045 = vmatmul.msk.f32.vlgmr.msrb.gmra.mxu0 %vm529_vm1, %v509_v18 }
 0x161   : > { %v518_v19 = vpop.permute.xlu1 %517  ;;  %v507_v20 = vpop.permute.xlu0 %506 }
 0x162   : > { %1043 = vmatmul.msk.f32.vlgmr.msrb.gmra.mxu3 %vm529_vm1, %v507_v20  ;;  %1046 = vmatpush.xpose.msk.msrb.mxu1 %vm529_vm1, %v518_v19 }
 0x165   : > { %1047 = vmatmul.msk.f32.vlgmr.msrb.gmra.mxu1 %vm529_vm1, %v511_v21 }
 0x16e   : > { %v551_v22 = vpop.f32.mrf.mxu3 }
 0x16f   : > { %v626_v23 = vsel %vm529_vm1, %v551_v22, -inf }
 0x170   : > { %627 = vmax.xlane.f32.xlu0 %v626_v23 }
 0x1da   : > { %v599_v29 = vpop.f32.mrf.mxu0 }
 0x1db   : > { %v632_v30 = vsel %vm529_vm1, %v599_v29, -inf }
 0x1dc   : > { %633 = vmax.xlane.f32.xlu2 %v632_v30 }
 0x1e2   : > { %v623_v31 = vpop.f32.mrf.mxu1 }
 0x1e3   : > { %v628_v32 = vpop.xlane.xlu0 %627  ;;  %v635_v33 = vsel %vm529_vm1, %v623_v31, -inf }
 0x1e4   : > { %v638_v34 = vsub.f32 %v551_v22, %v628_v32  ;;  %636 = vmax.xlane.f32.xlu2 %v635_v33  ;;  %v1145_v22 = vld [vmem:[%s1705_s6] ss:$0 sm:$0xff] }
 0x1e5   : > { %v575_v35 = vpop.f32.mrf.mxu3 }
 0x1e6   : > { %v642_v36 = vmul.f32 1.442695, %v638_v34  ;;  %v629_v37 = vsel %vm529_vm1, %v575_v35, -inf }
 0x1e7   : > { %630 = vmax.xlane.f32.xlu1 %v629_v37 }
 0x1e8   : > { %1146 = vpow2.f32 %v642_v36 }
 0x1ee   : > { %v1147_v38 = vpop.eup %1146 }
 0x1ef   : > { %v650_v39 = vsel %vm529_vm1, %v1147_v38, 0.0 }
 0x1f0   : > { %651 = vadd.xlane.f32.xlu0 %v650_v39 }
 0x1fc   : > { %520 = vrot.lane.b32.xlu2 %v503_v42, %s1393_s12 }
 0x24f   : > { %v634_v43 = vpop.xlane.xlu2 %633 }
 0x250   : > { %v640_v44 = vsub.f32 %v599_v29, %v634_v43 }
 0x252   : > { %v646_v45 = vmul.f32 1.442695, %v640_v44 }
 0x254   : > { %1148 = vpow2.f32 %v646_v45 }
 0x257   : > { %v637_v46 = vpop.xlane.xlu2 %636 }
 0x258   : > { %v641_v47 = vsub.f32 %v623_v31, %v637_v46 }
 0x25a   : > { %v1149_v48 = vpop.eup %1148  ;;  %v648_v49 = vmul.f32 1.442695, %v641_v47  ;;  %v631_v50 = vpop.xlane.xlu1 %630 }
 0x25b   : > { %v639_v51 = vsub.f32 %v575_v35, %v631_v50  ;;  %v656_v52 = vsel %vm529_vm1, %v1149_v48, 0.0 }
 0x25c   : > { %1150 = vpow2.f32 %v648_v49  ;;  %657 = vadd.xlane.f32.xlu0 %v656_v52 }
 0x25d   : > { %v644_v53 = vmul.f32 1.442695, %v639_v51 }
 0x25f   : > { %1152 = vpow2.f32 %v644_v53  ;;  %v521_v61 = vpop.permute.xlu2 %520 }
 0x260   : > { %711 = vmatpush.msra.mxu3 %v521_v61 }
 0x262   : > { %v1151_v54 = vpop.eup %1150  ;;  %806 = vmatpush.msrb.mxu3 %v762_v62 }
 0x263   : > { %v652_v55 = vpop.xlane.xlu0 %651  ;;  %v659_v56 = vsel %vm529_vm1, %v1151_v54, 0.0 }
 0x264   : > { %1154 = vrcp.f32 %v652_v55  ;;  %660 = vadd.xlane.f32.xlu1 %v659_v56 }
 0x265   : > { %v1153_v57 = vpop.eup %1152 }
 0x266   : > { %v653_v60 = vsel %vm529_vm1, %v1153_v57, 0.0 }
 0x26a   : > { %v1155_v58 = vpop.eup %1154 }
 0x26b   : > { %v666_v59 = vmul.f32 %v1155_v58, %v1147_v38 }
 0x26c   : > { %654 = vadd.xlane.f32.xlu1 %v653_v60 }
 0x26d   : > { %1048 = vmatmul.msk.f32.vlgmr.msrb.gmra.mxu2 %vm529_vm1, %v666_v59 }
 0x270   : > { %523 = vrot.lane.b32.xlu0 %v503_v42, %s1392_s13 }
 0x285   : > { %526 = vrot.lane.b32.xlu1 %v503_v42, %s1394_s1 }
 0x2cf   : > { %v658_v63 = vpop.xlane.xlu0 %657 }
 0x2d0   : > { %1156 = vrcp.f32 %v658_v63 }
 0x2d6   : > { %v1157_v1 = vpop.eup %1156 }
 0x2d7   : > { %v661_v0 = vpop.xlane.xlu1 %660  ;;  %v668_v3 = vmul.f32 %v1157_v1, %v1149_v48 }
 0x2df   : > { %v655_v2 = vpop.xlane.xlu1 %654 }
 0x2e0   : > { %1158 = vrcp.f32 %v655_v2 }
 0x2e1   : > { %1160 = vrcp.f32 %v661_v0 }
 0x2e2   : > { %v524_v4 = vpop.permute.xlu0 %523 }
 0x2e3   : > { %734 = vmatpush.msra.mxu0 %v524_v4 }
 0x2e4   : > { %1050 = vmatmul.msk.f32.vlgmr.msra.gmra.mxu0 %vm529_vm1, %v668_v3 }
 0x2e5   : > { %831 = vmatpush.msrb.mxu0 %v812_v11 }
 0x2e6   : > { %v1159_v5 = vpop.eup %1158 }
 0x2e7   : > { %v667_v6 = vmul.f32 %v1159_v5, %v1153_v57  ;;  %v1161_v8 = vpop.eup %1160 }
 0x2e8   : > { %v669_v9 = vmul.f32 %v1161_v8, %v1151_v54 }
 0x2e9   : > { %1049 = vmatmul.msk.f32.vlgmr.msra.gmra.mxu3 %vm529_vm1, %v667_v6 }
 0x2f0   : > { %v690_v7 = vpop.f32.mrf.mxu2 }
 0x2f1   : > { %1053 = vmatmul.msk.f32.vlgmr.msrb.gmra.mxu3 %vm529_vm1, %v690_v7 }
 0x2f7   : > { %v527_v10 = vpop.permute.xlu1 %526 }
 0x2f8   : > { %757 = vmatpush.msra.mxu1 %v527_v10 }
 0x2f9   : > { %1051 = vmatmul.msk.f32.vlgmr.msra.gmra.mxu1 %vm529_vm1, %v669_v9 }
 0x2fa   : > { %857 = vmatpush.msrb.mxu1 %v838_v13 }
 0x361   : > { %v736_v14 = vpop.f32.mrf.mxu0 }
 0x362   : > { %1054 = vmatmul.msk.f32.vlgmr.msrb.gmra.mxu0 %vm529_vm1, %v736_v14 }
 0x36c   : > { %v713_v15 = vpop.f32.mrf.mxu3 }
 0x36d   : > { %1052 = vmatmul.msk.f32.vlgmr.msra.gmra.mxu2 %vm529_vm1, %v713_v15 }
 0x374   : > { %v808_v17 = vpop.f32.mrf.mxu3 }
 0x376   : > { %v759_v16 = vpop.f32.mrf.mxu1 }
 0x377   : > { %1055 = vmatmul.msk.f32.vlgmr.msrb.gmra.mxu1 %vm529_vm1, %v759_v16 }
 0x3df   : > { %v833_v20 = vpop.f32.mrf.mxu0 }
 0x3f0   : > { %v785_v18 = vpop.f32.mrf.mxu2 }
 0x3f1   : > { %v809_v19 = vadd.f32 %v808_v17, %v785_v18 }
 0x3f3   : > { %v836_v21 = vadd.f32 %v833_v20, %v809_v19 }
 0x3f4   : > { %v859_v23 = vpop.f32.mrf.mxu1 }
 0x3f5   : > { %v862_v24 = vadd.f32 %v859_v23, %v836_v21 }
 0x3f7   : > { %v867_v25 = vadd.f32 %v1145_v22, %v862_v24 }
 0x3f9   : > { %868 = vst [vmem:[%s403_s9] sm:$0xff] %v867_v25 }
 0x3fa   : > { %1339 = shalt.err (!%p1336_p10)
}
 0x3fb   : > { %1074 = dma.vmem_to_hbm [thread:$0]  (%p1504_p0), %s883_s16, 128, %s885_s30, %s870_s8  }
 0x3fc PF: > { %s1736_s28 = sld [smem:[#allocation16_spill]] }
 0x3fd   : > { %s1738_s1 = sld [smem:[#allocation17_spill]] }
 0x402   : > { %s896_s3 = sand.u32 1, %s1736_s28  }
 0x403   : > { %p1739_p6 = scmp.ge.s32.totalorder %s1738_s1, 2  ;;  %s897_s19 = scalar_lea.sflag [#allocation4], %s896_s3 }
 0x405   : > { %p1094_p11 = pnand %p1739_p6, %p1510_p5 }
 0x407   : > { %p1095_p12 = pneg %p1094_p11 }
 0x409   : > { %1369 = dma.done.wait (%p1095_p12), %s897_s19, 128  }
 0x40a   : > { %1371 = vsyncadd (%p1095_p12), %s897_s19, 4294967168  ;;  %s1740_s27 = sld [smem:[#allocation18_spill]]  ;;  %s1742_s24 = smov %s1378_s25 }
 0x40b   : > { %s1741_s22 = sld [smem:[#allocation19_spill]]  ;;  %s1743_s25 = smov %s1382_s26 }
 0x410   : > { %p24_p3 = scmp.ge.s32.totalorder %s1740_s27, 4  }
 0x411   : > { %s1744_s26 = smov %s1741_s22 }
 0x412   :  { %26 = sbr.rel (!%p24_p3) target bundleno = 11 (0xb), region = 132 }
 0x417   :  { %903 = vsyncpa [#allocation3], 1 }
 0x418   :  { %905 = vsyncpa [#allocation3 + $0x1], 1 }
 0x419   :  { %906 = vsyncpa [#allocation6], 1 }
 0x41a   :  { %908 = vsyncpa [#allocation6 + $0x1], 1 }
 0x41b   :  { %909 = vsyncpa [#allocation9], 1 }
 0x41c   :  { %910 = vsyncpa [#allocation4], 1 }
 0x41d   :  { %912 = vsyncpa [#allocation4 + $0x1], 1 }

// kernel: tpu_custom_call.1
= control target key start
LH: loop header
LB: loop body
LE: loop exit
PB: predicated region body
PF: predicated region fallthrough
CT: control target
= control target key end

     0   :  { %s1699_s0 = inlined_call_operand.hbm [shape: f32[2,8,32], index: 0, kind: input, shape index: {}]   ;;  %s1700_s1 = inlined_call_operand.hbm [shape: f32[2,8,32], index: 1, kind: input, shape index: {}]   ;;  %s1701_s2 = inlined_call_operand.hbm [shape: f32[2,8,32], index: 2, kind: input, shape index: {}]   ;;  %s1702_s3 = inlined_call_operand.hbm [shape: f32[3,32,32], index: 3, kind: input, shape index: {}]   ;;  %s1703_s4 = inlined_call_operand.vmem [shape: f32[3,1,32], index: 4, kind: input, shape index: {}]   ;;  %s1704_s5 = inlined_call_operand.hbm [shape: f32[4,8,128], index: 5, kind: input, shape index: {}]   ;;  %s1705_s6 = inlined_call_operand.vmem [shape: f32[1,128], index: 6, kind: input, shape index: {}]   ;;  %s1706_s7 = inlined_call_operand.hbm [shape: f32[2,8,128], index: 7, kind: output, shape index: {}]  }
   0x1   :  { %1716 = sst [smem:[#allocation21_spill]] %s1700_s1 }
   0x2   :  { %1717 = sst [smem:[#allocation22_spill]] %s1702_s3 }
   0x3   :  { %12 = vsyncpa [#allocation3], 0 }
   0x4   :  { %14 = vsyncpa [#allocation3 + $0x1], 0 }
   0x5   :  { %15 = vsyncpa [#allocation6], 0 }
   0x6   :  { %17 = vsyncpa [#allocation6 + $0x1], 0 }
   0x7   :  { %18 = vsyncpa [#allocation9], 0 }
   0x8   :  { %19 = vsyncpa [#allocation4], 0 }
   0x9   :  { %21 = vsyncpa [#allocation4 + $0x1], 0  ;;  %s1435_s24 = smov 0   ;;  %s1437_s25 = smov 0  }
   0xa   :  { %s1439_s26 = smov 0   ;;  %s1441_s27 = smov 0  }
   0xb LB: > { %1718 = sst [smem:[#allocation16_spill]] %s1374_s24  ;;  %s1459_s8 = sadd.s32 4294967295, %s1386_s27   ;;  %s1386_s27 = sphi %s1441_s27, %s1740_s27   ;;  %s1382_s26 = sphi %s1439_s26, %s1744_s26   ;;  %s1378_s25 = sphi %s1437_s25, %s1743_s25   ;;  %s1374_s24 = sphi %s1435_s24, %s1742_s24  }
   0xc   : > { %1719 = sst [smem:[#allocation17_spill]] %s1386_s27  ;;  %p1018_p0 = scmp.ge.s32.totalorder %s1386_s27, 1 }
   0xd   : > { %s1720_s3 = sld [smem:[#allocation22_spill]]  ;;  %p1715_p1 = scmp.eq.s32.totalorder %s1459_s8, 0 }
   0xe   : > { %p220_p2 = scmp.lt.s32.totalorder %s1386_s27, 3  ;;  %s1388_s10 = smov [#allocation8]  }
   0xf   : > { %s233_s11 = sshll.u32 %s1388_s10, 4  ;;  %s1707_s13 = smov 128   ;;  %s234_s11 = int_to_ptr.vmem [resolvable:$true] %s233_s11 }
  0x10   : > { %p1464_p3 = pnand %p1018_p0, %p220_p2  ;;  %s1708_s14 = smov 8  }
  0x11   : > { %s1017_s15 = sadd.s32 4294967294, %s1386_s27   ;;  %s1484_s16 = sadd.s32 1, %s1386_s27  }
  0x12   : > { %p1076_p4 = pneg %p1464_p3  ;;  %1723 = sst [smem:[#allocation18_spill]] %s1484_s16 }
  0x13   : > { %s231_s30 = sshll.u32 %s1720_s3, 4  ;;  %s34_s17 = sadd.s32 1, %s1382_s26  ;;  %s232_s30 = int_to_ptr.hbm [resolvable:$true] %s231_s30 }
  0x14   : > { %p1473_p6 = pnand %p1076_p4, %p1715_p1  ;;  %s31_s18 = ssub.s32 %s1386_s27, %s1484_s16 }
  0x15   : > { %p41_p7 = scmp.ne.s32.totalorder %s1382_s26, %s1378_s25  ;;  %p32_p8 = scmp.eq.s32.totalorder %s31_s18, 0 }
  0x16   : > { %1079 = dma.hbm_to_vmem [thread:$0]  (!%p1473_p6), %s232_s30, 1536, %s234_s11, [#allocation9], %s1707_s13, %s1707_s13, %s1708_s14  }
  0x17   : > { %p42_p9 = scmp.eq.s32.totalorder %s1386_s27, 0  ;;  %p47_p10 = scmp.ne.s32.totalorder %s1378_s25, %s1374_s24 }
  0x18   : > { %p207_p11 = scmp.eq.s32.totalorder %s1459_s8, 1  ;;  %p213_p2 = scmp.eq.s32.totalorder %s1017_s15, 1 }
  0x19   : > { %s1496_s19 = scalar_select %p32_p8, %s1382_s26, %s34_s17  }
  0x1a   : > { %p43_p12 = por %p42_p9, %p41_p7  ;;  %p1500_p13 = por %p1715_p1, %p47_p10 }
  0x1b   : > { %1724 = sst [smem:[#allocation19_spill]] %s1496_s19  ;;  %p1504_p0 = por %p207_p11, %p41_p7 }
  0x1c   : > { %p1099_p4 = scmp.lt.s32.totalorder %s1386_s27, 2  ;;  %s1709_s22 = sand.u32 1, %s1382_s26  }
  0x1d   : > { %p1510_p5 = por %p213_p2, %p47_p10  ;;  %s1516_s28 = sshll.u32 %s1709_s22, 3 }
  0x1e   : > { %s1519_s29 = sshll.u32 %s1386_s27, 3  ;;  %p1521_p8 = pnand %p1099_p4, %p43_p12 }
  0x1f   : > { %s1727_s23 = scalar_select %p1510_p5, 1, 0 }
  0x20   : > { %s286_s10 = sand.u32 1, %s1386_s27   ;;  %s1730_s1 = sld [smem:[#allocation21_spill]] }
  0x21   : > { %1728 = sst [smem:[#allocation20_spill]] %s1727_s23  ;;  %s290_s18 = scalar_lea.vmem [#allocation5], %s1516_s28 }
  0x22   : > { %s298_s13 = sshll.u32 %s290_s18, 4  ;;  %s248_s19 = sshll.u32 %s1704_s5, 4  ;;  %s299_s13 = int_to_ptr.vmem [resolvable:$true] %s298_s13  ;;  %s249_s19 = int_to_ptr.hbm [resolvable:$true] %s248_s19 }
  0x23   : > { %s1534_s16 = scalar_lea.sflag [#allocation6], %s286_s10  ;;  %p1196_p9 = pneg %p1521_p8 }
  0x26   : > { %s294_s17 = scalar_lea.hbm %s1730_s1, %s1519_s29 }
  0x27   : > { %s296_s14 = sshll.u32 %s294_s17, 4  ;;  %s1199_s17 = scalar_lea.hbm %s1730_s1, 16  ;;  %s297_s14 = int_to_ptr.hbm [resolvable:$true] %s296_s14 }
  0x28   : > { %s1192_s23 = sshra.s32 %s297_s14, 4  ;;  %s1193_s23 = int_to_ptr.hbm [resolvable:$true] %s1192_s23 }
  0x29   : > { %s1194_s24 = scalar_lea.hbm %s1193_s23, 8  ;;  %p1200_p12 = scmp.lt.s32.totalorder %s1193_s23, %s1730_s1 }
  0x2a   : > { %p1195_p7 = scmp.ne.s32.totalorder %s1193_s23, %s1194_s24  ;;  %p1201_p2 = scmp.lt.s32.totalorder %s1199_s17, %s1194_s24 }
  0x2c   : > { %p1197_p10 = pnand %p1196_p9, %p1195_p7  ;;  %p1202_p4 = por %p1201_p2, %p1200_p12 }
  0x2e   : > { %p1198_p11 = pneg %p1197_p10 }
  0x30   : > { %p1203_p1 = pnand %p1202_p4, %p1198_p11 }
  0x32   : > { %1206 = shalt.err (!%p1203_p1)
}
  0x33   : > { %1089 = dma.hbm_to_vmem [thread:$0]  (!%p1521_p8), %s297_s14, 128, %s299_s13, %s1534_s16  }
  0x34   : > { %s1391_s3 = smov [#allocation10]   ;;  %s1731_s27 = smov 8  }
  0x35   : > { %s250_s22 = sshll.u32 %s1391_s3, 4  ;;  %s1732_s23 = smov 128   ;;  %s251_s22 = int_to_ptr.vmem [resolvable:$true] %s250_s22 }
  0x36   : > { %1082 = dma.hbm_to_vmem [thread:$0]  (!%p1473_p6), %s249_s19, 512, %s251_s22, [#allocation9], %s1732_s23, %s1732_s23, %s1731_s27  }
  0x37   : > { %s275_s11 = scalar_lea.hbm %s1699_s0, %s1519_s29  ;;  %s271_s15 = scalar_lea.vmem [#allocation2], %s1516_s28 }
  0x38   : > { %s279_s17 = sshll.u32 %s271_s15, 4  ;;  %s277_s18 = sshll.u32 %s275_s11, 4  ;;  %s280_s17 = int_to_ptr.vmem [resolvable:$true] %s279_s17  ;;  %s278_s18 = int_to_ptr.hbm [resolvable:$true] %s277_s18 }
  0x39   : > { %s1733_s13 = sand.u32 1, %s1382_s26   ;;  %s1252_s1 = sshra.s32 %s278_s18, 4  ;;  %s1253_s1 = int_to_ptr.hbm [resolvable:$true] %s1252_s1 }
  0x3a   : > { %s268_s14 = scalar_lea.sflag [#allocation3], %s1733_s13  ;;  %s1254_s3 = scalar_lea.hbm %s1253_s1, 8 }
  0x3b   : > { %p1255_p1 = scmp.ne.s32.totalorder %s1253_s1, %s1254_s3  ;;  %s1259_s22 = scalar_lea.hbm %s1699_s0, 16 }
  0x3c   : > { %p1260_p6 = scmp.lt.s32.totalorder %s1253_s1, %s1699_s0  ;;  %p1261_p11 = scmp.lt.s32.totalorder %s1259_s22, %s1254_s3 }
  0x3d   : > { %p1257_p7 = pnand %p1255_p1, %p1196_p9 }
  0x3e   : > { %p1262_p12 = por %p1261_p11, %p1260_p6 }
  0x3f   : > { %p1258_p10 = pneg %p1257_p7 }
  0x41   : > { %p1263_p2 = pnand %p1262_p12, %p1258_p10 }
  0x43   : > { %1266 = shalt.err (!%p1263_p2)
}
  0x44   : > { %1086 = dma.hbm_to_vmem [thread:$0]  (!%p1521_p8), %s278_s18, 128, %s280_s17, %s268_s14  }
  0x45   : > { %s313_s11 = scalar_lea.hbm %s1701_s2, %s1519_s29  ;;  %s309_s15 = scalar_lea.vmem [#allocation7], %s1516_s28 }
  0x46   : > { %s317_s13 = sshll.u32 %s309_s15, 4  ;;  %s315_s12 = sshll.u32 %s313_s11, 4  ;;  %s318_s13 = int_to_ptr.vmem [resolvable:$true] %s317_s13  ;;  %s316_s12 = int_to_ptr.hbm [resolvable:$true] %s315_s12 }
  0x47   : > { %s1282_s1 = sshra.s32 %s316_s12, 4  ;;  %s1289_s17 = scalar_lea.hbm %s1701_s2, 16  ;;  %s1283_s1 = int_to_ptr.hbm [resolvable:$true] %s1282_s1 }
  0x48   : > { %s1284_s3 = scalar_lea.hbm %s1283_s1, 8  ;;  %p1290_p10 = scmp.lt.s32.totalorder %s1283_s1, %s1701_s2 }
  0x49   : > { %p1285_p4 = scmp.ne.s32.totalorder %s1283_s1, %s1284_s3  ;;  %p1291_p6 = scmp.lt.s32.totalorder %s1289_s17, %s1284_s3 }
  0x4b   : > { %p1287_p1 = pnand %p1285_p4, %p1196_p9  ;;  %p1292_p11 = por %p1291_p6, %p1290_p10 }
  0x4d   : > { %p1288_p7 = pneg %p1287_p1 }
  0x4f   : > { %p1293_p12 = pnand %p1292_p11, %p1288_p7 }
  0x51   : > { %1296 = shalt.err (!%p1293_p12)
}
  0x52   : > { %1092 = dma.hbm_to_vmem [thread:$0]  (!%p1521_p8), %s316_s12, 128, %s318_s13, %s1534_s16  }
  0x53   : > { %326 = sbr.rel (%p1464_p3) target bundleno = 1020 (0x3fc), region = 48  ;;  %s1593_s28 = sand.u32 (!%p1464_p3), 1, %s1378_s25  }
  0x54   : > { %s1596_s29 = sshll.u32 (!%p1464_p3), %s1593_s28, 3  ;;  %s329_s27 = scalar_lea.sflag (!%p1464_p3), [#allocation3], %s1593_s28 }
  0x55   : > { %s332_s23 = scalar_lea.vmem (!%p1464_p3), [#allocation2], %s1596_s29 }
  0x58   : > { %1357 = dma.done.wait (%p1500_p13), %s329_s27, 128  }
  0x59   : > { %1359 = vsyncadd (%p1500_p13), %s329_s27, 4294967168  ;;  %s338_s9 = sand.u32 1, %s1459_s8   ;;  %s342_s30 = scalar_lea.vmem [#allocation5], %s1596_s29 }
  0x5a   : > { %s339_s16 = scalar_lea.sflag [#allocation6], %s338_s9 }
  0x5b   : > { %1361 = dma.done.wait (%p1500_p13), %s339_s16, 256  }
  0x5c   : > { %1363 = vsyncadd (%p1500_p13), %s339_s16, 4294967040  ;;  %s352_s24 = scalar_lea.vmem [#allocation7], %s1596_s29  ;;  %p1734_p3 = scmp.eq.s32.totalorder %s1459_s8, 0 }
  0x5e   : > { %1365 = dma.done.wait (%p1734_p3), [#allocation9], 2048   ;;  %p1735_p8 = pmov %p1734_p3 }
  0x5f   : > { %v442_v0 = vld [vmem:[#allocation8 + $0x38] sm:$0xff]  ;;  %v441_v1 = vld [vmem:[#allocation8 + $0x30] sm:$0xff]  ;;  %v440_v4 = vld [vmem:[#allocation8 + $0x28] sm:$0xff]  ;;  %vm413_vm0 = vcmask 261120   ;;  %vm529_vm1 = vcmask 64512   ;;  %s1392_s13 = smov 112  }
  0x60   : > { %1367 = vsyncadd (%p1735_p8), [#allocation9], 4294965248  ;;  %v408_v2 = vld [vmem:[#allocation8 + $0x18] sm:$0xff]  ;;  %463 = vmatpush.msra.mxu1 %v442_v0  ;;  %v407_v3 = vld [vmem:[#allocation8 + $0x10] sm:$0xff]  ;;  %s1393_s12 = smov 120   ;;  %s1394_s1 = smov 104  }
  0x61   : > { %429 = vmatpush.msra.mxu0 %v408_v2  ;;  %v406_v5 = vld [vmem:[#allocation8 + $0x8] sm:$0xff]  ;;  %v439_v6 = vld [vmem:[#allocation8 + $0x20] sm:$0xff]  ;;  %v404_v9 = vld [vmem:[%s332_s23] sm:$0xff]  ;;  %s1057_s22 = sshll.u32 %s1459_s8, 3  ;;  %s403_s9 = scalar_lea.vmem [#allocation11], %s1596_s29 }
  0x62   : > { %464 = vmatpush.msra.mxu1 %v441_v1  ;;  %v405_v7 = vld [vmem:[#allocation8] sm:$0xff]  ;;  %v1142_v10 = vld [vmem:[%s1703_s4 + $0x1] ss:$0 sm:$0xff]  ;;  %v1143_v11 = vld [vmem:[%s1703_s4] ss:$0 sm:$0xff]  ;;  %s880_s14 = scalar_lea.hbm %s1706_s7, %s1057_s22  ;;  %s882_s16 = sshll.u32 %s403_s9, 4  ;;  %s883_s16 = int_to_ptr.vmem [resolvable:$true] %s882_s16 }
  0x63   : > { %430 = vmatpush.msra.mxu0 %v407_v3  ;;  %v437_v8 = vld [vmem:[%s342_s30] sm:$0xff]  ;;  %v476_v24 = vld [vmem:[#allocation8 + $0x58] sm:$0xff]  ;;  %v475_v25 = vld [vmem:[#allocation8 + $0x50] sm:$0xff]  ;;  %s884_s30 = sshll.u32 %s880_s14, 4  ;;  %s870_s8 = scalar_lea.sflag [#allocation4], %s1593_s28  ;;  %s885_s30 = int_to_ptr.hbm [resolvable:$true] %s884_s30 }
  0x64   : > { %465 = vmatpush.msra.mxu1 %v440_v4  ;;  %497 = vmatpush.msra.mxu2 %v476_v24  ;;  %v474_v26 = vld [vmem:[#allocation8 + $0x48] sm:$0xff]  ;;  %v473_v27 = vld [vmem:[#allocation8 + $0x40] sm:$0xff]  ;;  %v471_v28 = vld [vmem:[%s352_s24] sm:$0xff]  ;;  %s1326_s24 = sshra.s32 %s885_s30, 4  ;;  %s1332_s15 = scalar_lea.hbm %s1706_s7, 16  ;;  %s1327_s24 = int_to_ptr.hbm [resolvable:$true] %s1326_s24 }
  0x65   : > { %431 = vmatpush.msra.mxu0 %v406_v5  ;;  %v1144_v40 = vld [vmem:[%s1703_s4 + $0x2] ss:$0 sm:$0xff]  ;;  %v762_v62 = vld [vmem:[#allocation10] sm:$0xff]  ;;  %s1328_s20 = scalar_lea.hbm %s1327_s24, 8  ;;  %p1333_p4 = scmp.lt.s32.totalorder %s1327_s24, %s1706_s7 }
  0x66   : > { %466 = vmatpush.msra.mxu1 %v439_v6  ;;  %498 = vmatpush.msra.mxu2 %v475_v25  ;;  %p1329_p13 = scmp.ne.s32.totalorder %s1327_s24, %s1328_s20  ;;  %p1334_p1 = scmp.lt.s32.totalorder %s1332_s15, %s1328_s20 }
  0x67   : > { %432 = vmatpush.msra.mxu0 %v405_v7  ;;  %1037 = vmatmul.msk.f32.vlgmr.msra.gmra.mxu1 %vm413_vm0, %v437_v8 }
  0x68   : > { %1035 = vmatmul.msk.f32.vlgmr.msra.gmra.mxu0 %vm413_vm0, %v404_v9  ;;  %499 = vmatpush.msra.mxu2 %v474_v26  ;;  %p1330_p9 = pnand %p1329_p13, %p1504_p0  ;;  %p1335_p7 = por %p1334_p1, %p1333_p4 }
  0x6a   : > { %500 = vmatpush.msra.mxu2 %v473_v27  ;;  %p1331_p2 = pneg %p1330_p9 }
  0x6b   : > { %1039 = vmatmul.msk.f32.vlgmr.msra.gmra.mxu2 %vm413_vm0, %v471_v28 }
  0x6c   : > { %p1336_p10 = pnand %p1335_p7, %p1331_p2 }
  0xe4   : > { %v468_v12 = vpop.f32.mrf.mxu1 }
  0xe5   : > { %v434_v13 = vpop.f32.mrf.mxu0  ;;  %v469_v14 = vadd.f32 %v1142_v10, %v468_v12  ;;  %v764_v12 = vld [vmem:[#allocation10 + $0x8] sm:$0xff] }
  0xe6   : > { %v435_v15 = vadd.f32 %v1143_v11, %v434_v13  ;;  %v812_v11 = vld [vmem:[#allocation10 + $0x10] sm:$0xff]  ;;  %v838_v13 = vld [vmem:[#allocation10 + $0x18] sm:$0xff] }
  0xe7   : > { %515 = vrot.lane.b32.xlu1 %v469_v14, %s1392_s13  ;;  %513 = vrot.lane.b32.xlu0 %v469_v14, %s1393_s12 }
  0xe8   : > { %1040 = vmatpush.xpose.msk.msra.mxu3 %vm529_vm1, %v469_v14  ;;  %508 = vrot.lane.b32.xlu2 %v435_v15, %s1392_s13 }
  0xeb   : > { %1041 = vmatmul.msk.f32.vlgmr.msra.gmra.mxu3 %vm529_vm1, %v435_v15 }
  0xee   : > { %v502_v41 = vpop.f32.mrf.mxu2 }
  0xef   : > { %517 = vrot.lane.b32.xlu1 %v469_v14, %s1394_s1  ;;  %506 = vrot.lane.b32.xlu0 %v435_v15, %s1393_s12  ;;  %v503_v42 = vadd.f32 %v1144_v40, %v502_v41 }
  0xf0   : > { %510 = vrot.lane.b32.xlu2 %v435_v15, %s1394_s1 }
  0xf1   : > { %688 = vmatpush.msrb.mxu2 %v503_v42 }
  0xf3   : > { %783 = vmatpush.msra.mxu2 %v764_v12 }
 0x142   : > { %v509_v18 = vpop.permute.xlu2 %508 }
 0x14a   : > { %v511_v21 = vpop.permute.xlu2 %510 }
 0x159   : > { %v516_v16 = vpop.permute.xlu1 %515  ;;  %v514_v17 = vpop.permute.xlu0 %513 }
 0x15a   : > { %1042 = vmatpush.xpose.msk.msrb.mxu3 %vm529_vm1, %v514_v17  ;;  %1044 = vmatpush.xpose.msk.msrb.mxu0 %vm529_vm1, %v516_v16 }
 0x15d   : > { %1045 = vmatmul.msk.f32.vlgmr.msrb.gmra.mxu0 %vm529_vm1, %v509_v18 }
 0x161   : > { %v518_v19 = vpop.permute.xlu1 %517  ;;  %v507_v20 = vpop.permute.xlu0 %506 }
 0x162   : > { %1043 = vmatmul.msk.f32.vlgmr.msrb.gmra.mxu3 %vm529_vm1, %v507_v20  ;;  %1046 = vmatpush.xpose.msk.msrb.mxu1 %vm529_vm1, %v518_v19 }
 0x165   : > { %1047 = vmatmul.msk.f32.vlgmr.msrb.gmra.mxu1 %vm529_vm1, %v511_v21 }
 0x16e   : > { %v551_v22 = vpop.f32.mrf.mxu3 }
 0x16f   : > { %v626_v23 = vsel %vm529_vm1, %v551_v22, -inf }
 0x170   : > { %627 = vmax.xlane.f32.xlu0 %v626_v23 }
 0x1da   : > { %v599_v29 = vpop.f32.mrf.mxu0 }
 0x1db   : > { %v632_v30 = vsel %vm529_vm1, %v599_v29, -inf }
 0x1dc   : > { %633 = vmax.xlane.f32.xlu2 %v632_v30 }
 0x1e2   : > { %v623_v31 = vpop.f32.mrf.mxu1 }
 0x1e3   : > { %v628_v32 = vpop.xlane.xlu0 %627  ;;  %v635_v33 = vsel %vm529_vm1, %v623_v31, -inf }
 0x1e4   : > { %v638_v34 = vsub.f32 %v551_v22, %v628_v32  ;;  %636 = vmax.xlane.f32.xlu2 %v635_v33  ;;  %v1145_v22 = vld [vmem:[%s1705_s6] ss:$0 sm:$0xff] }
 0x1e5   : > { %v575_v35 = vpop.f32.mrf.mxu3 }
 0x1e6   : > { %v642_v36 = vmul.f32 1.442695, %v638_v34  ;;  %v629_v37 = vsel %vm529_vm1, %v575_v35, -inf }
 0x1e7   : > { %630 = vmax.xlane.f32.xlu1 %v629_v37 }
 0x1e8   : > { %1146 = vpow2.f32 %v642_v36 }
 0x1ee   : > { %v1147_v38 = vpop.eup %1146 }
 0x1ef   : > { %v650_v39 = vsel %vm529_vm1, %v1147_v38, 0.0 }
 0x1f0   : > { %651 = vadd.xlane.f32.xlu0 %v650_v39 }
 0x1fc   : > { %520 = vrot.lane.b32.xlu2 %v503_v42, %s1393_s12 }
 0x24f   : > { %v634_v43 = vpop.xlane.xlu2 %633 }
 0x250   : > { %v640_v44 = vsub.f32 %v599_v29, %v634_v43 }
 0x252   : > { %v646_v45 = vmul.f32 1.442695, %v640_v44 }
 0x254   : > { %1148 = vpow2.f32 %v646_v45 }
 0x257   : > { %v637_v46 = vpop.xlane.xlu2 %636 }
 0x258   : > { %v641_v47 = vsub.f32 %v623_v31, %v637_v46 }
 0x25a   : > { %v1149_v48 = vpop.eup %1148  ;;  %v648_v49 = vmul.f32 1.442695, %v641_v47  ;;  %v631_v50 = vpop.xlane.xlu1 %630 }
 0x25b   : > { %v639_v51 = vsub.f32 %v575_v35, %v631_v50  ;;  %v656_v52 = vsel %vm529_vm1, %v1149_v48, 0.0 }
 0x25c   : > { %1150 = vpow2.f32 %v648_v49  ;;  %657 = vadd.xlane.f32.xlu0 %v656_v52 }
 0x25d   : > { %v644_v53 = vmul.f32 1.442695, %v639_v51 }
 0x25f   : > { %1152 = vpow2.f32 %v644_v53  ;;  %v521_v61 = vpop.permute.xlu2 %520 }
 0x260   : > { %711 = vmatpush.msra.mxu3 %v521_v61 }
 0x262   : > { %v1151_v54 = vpop.eup %1150  ;;  %806 = vmatpush.msrb.mxu3 %v762_v62 }
 0x263   : > { %v652_v55 = vpop.xlane.xlu0 %651  ;;  %v659_v56 = vsel %vm529_vm1, %v1151_v54, 0.0 }
 0x264   : > { %1154 = vrcp.f32 %v652_v55  ;;  %660 = vadd.xlane.f32.xlu1 %v659_v56 }
 0x265   : > { %v1153_v57 = vpop.eup %1152 }
 0x266   : > { %v653_v60 = vsel %vm529_vm1, %v1153_v57, 0.0 }
 0x26a   : > { %v1155_v58 = vpop.eup %1154 }
 0x26b   : > { %v666_v59 = vmul.f32 %v1155_v58, %v1147_v38 }
 0x26c   : > { %654 = vadd.xlane.f32.xlu1 %v653_v60 }
 0x26d   : > { %1048 = vmatmul.msk.f32.vlgmr.msrb.gmra.mxu2 %vm529_vm1, %v666_v59 }
 0x270   : > { %523 = vrot.lane.b32.xlu0 %v503_v42, %s1392_s13 }
 0x285   : > { %526 = vrot.lane.b32.xlu1 %v503_v42, %s1394_s1 }
 0x2cf   : > { %v658_v63 = vpop.xlane.xlu0 %657 }
 0x2d0   : > { %1156 = vrcp.f32 %v658_v63 }
 0x2d6   : > { %v1157_v1 = vpop.eup %1156 }
 0x2d7   : > { %v661_v0 = vpop.xlane.xlu1 %660  ;;  %v668_v3 = vmul.f32 %v1157_v1, %v1149_v48 }
 0x2df   : > { %v655_v2 = vpop.xlane.xlu1 %654 }
 0x2e0   : > { %1158 = vrcp.f32 %v655_v2 }
 0x2e1   : > { %1160 = vrcp.f32 %v661_v0 }
 0x2e2   : > { %v524_v4 = vpop.permute.xlu0 %523 }
 0x2e3   : > { %734 = vmatpush.msra.mxu0 %v524_v4 }
 0x2e4   : > { %1050 = vmatmul.msk.f32.vlgmr.msra.gmra.mxu0 %vm529_vm1, %v668_v3 }
 0x2e5   : > { %831 = vmatpush.msrb.mxu0 %v812_v11 }
 0x2e6   : > { %v1159_v5 = vpop.eup %1158 }
 0x2e7   : > { %v667_v6 = vmul.f32 %v1159_v5, %v1153_v57  ;;  %v1161_v8 = vpop.eup %1160 }
 0x2e8   : > { %v669_v9 = vmul.f32 %v1161_v8, %v1151_v54 }
 0x2e9   : > { %1049 = vmatmul.msk.f32.vlgmr.msra.gmra.mxu3 %vm529_vm1, %v667_v6 }
 0x2f0   : > { %v690_v7 = vpop.f32.mrf.mxu2 }
 0x2f1   : > { %1053 = vmatmul.msk.f32.vlgmr.msrb.gmra.mxu3 %vm529_vm1, %v690_v7 }
 0x2f7   : > { %v527_v10 = vpop.permute.xlu1 %526 }
 0x2f8   : > { %757 = vmatpush.msra.mxu1 %v527_v10 }
 0x2f9   : > { %1051 = vmatmul.msk.f32.vlgmr.msra.gmra.mxu1 %vm529_vm1, %v669_v9 }
 0x2fa   : > { %857 = vmatpush.msrb.mxu1 %v838_v13 }
 0x361   : > { %v736_v14 = vpop.f32.mrf.mxu0 }
 0x362   : > { %1054 = vmatmul.msk.f32.vlgmr.msrb.gmra.mxu0 %vm529_vm1, %v736_v14 }
 0x36c   : > { %v713_v15 = vpop.f32.mrf.mxu3 }
 0x36d   : > { %1052 = vmatmul.msk.f32.vlgmr.msra.gmra.mxu2 %vm529_vm1, %v713_v15 }
 0x374   : > { %v808_v17 = vpop.f32.mrf.mxu3 }
 0x376   : > { %v759_v16 = vpop.f32.mrf.mxu1 }
 0x377   : > { %1055 = vmatmul.msk.f32.vlgmr.msrb.gmra.mxu1 %vm529_vm1, %v759_v16 }
 0x3df   : > { %v833_v20 = vpop.f32.mrf.mxu0 }
 0x3f0   : > { %v785_v18 = vpop.f32.mrf.mxu2 }
 0x3f1   : > { %v809_v19 = vadd.f32 %v808_v17, %v785_v18 }
 0x3f3   : > { %v836_v21 = vadd.f32 %v833_v20, %v809_v19 }
 0x3f4   : > { %v859_v23 = vpop.f32.mrf.mxu1 }
 0x3f5   : > { %v862_v24 = vadd.f32 %v859_v23, %v836_v21 }
 0x3f7   : > { %v867_v25 = vadd.f32 %v1145_v22, %v862_v24 }
 0x3f9   : > { %868 = vst [vmem:[%s403_s9] sm:$0xff] %v867_v25 }
 0x3fa   : > { %1339 = shalt.err (!%p1336_p10)
}
 0x3fb   : > { %1074 = dma.vmem_to_hbm [thread:$0]  (%p1504_p0), %s883_s16, 128, %s885_s30, %s870_s8  }
 0x3fc PF: > { %s1736_s28 = sld [smem:[#allocation16_spill]] }
 0x3fd   : > { %s1738_s1 = sld [smem:[#allocation17_spill]] }
 0x402   : > { %s896_s3 = sand.u32 1, %s1736_s28  }
 0x403   : > { %p1739_p6 = scmp.ge.s32.totalorder %s1738_s1, 2  ;;  %s897_s19 = scalar_lea.sflag [#allocation4], %s896_s3 }
 0x405   : > { %p1094_p11 = pnand %p1739_p6, %p1510_p5 }
 0x407   : > { %p1095_p12 = pneg %p1094_p11 }
 0x409   : > { %1369 = dma.done.wait (%p1095_p12), %s897_s19, 128  }
 0x40a   : > { %1371 = vsyncadd (%p1095_p12), %s897_s19, 4294967168  ;;  %s1740_s27 = sld [smem:[#allocation18_spill]]  ;;  %s1742_s24 = smov %s1378_s25 }
 0x40b   : > { %s1741_s22 = sld [smem:[#allocation19_spill]]  ;;  %s1743_s25 = smov %s1382_s26 }
 0x410   : > { %p24_p3 = scmp.ge.s32.totalorder %s1740_s27, 4  }
 0x411   : > { %s1744_s26 = smov %s1741_s22 }
 0x412   :  { %26 = sbr.rel (!%p24_p3) target bundleno = 11 (0xb), region = 132 }
 0x417   :  { %903 = vsyncpa [#allocation3], 1 }
 0x418   :  { %905 = vsyncpa [#allocation3 + $0x1], 1 }
 0x419   :  { %906 = vsyncpa [#allocation6], 1 }
 0x41a   :  { %908 = vsyncpa [#allocation6 + $0x1], 1 }
 0x41b   :  { %909 = vsyncpa [#allocation9], 1 }
 0x41c   :  { %910 = vsyncpa [#allocation4], 1 }
 0x41d   :  { %912 = vsyncpa [#allocation4 + $0x1], 1 }

</bundles_post_ra>
